<compile_context>
chip_gen: v5e
topology: v5e:2x2
jax: 0.10.0
libtpu: 0.0.40
codegen_flags: <defaults>
</compile_context>

<pallas_src>
import functools
import math

import jax
import jax.numpy as jnp
from jax.experimental import pallas as pl
from jax.experimental.pallas import tpu as pltpu


CFG = dict(
    vocab_size=128,
    max_position=64,
    type_vocab=2,
    hidden=128,
    num_heads=4,
    head_dim=32,
    intermediate=256,
    num_layers=2,
    num_labels=3,
)


# --------------------------- fused encoder kernel ----------------------------

def _encoder_kernel(*refs, num_heads, head_dim, num_layers, eps, output_attentions):
    (emb_ref, mask_ref, eg_ref, eb_ref,
     wqkv_ref, bqkv_ref, wo_ref, bo_ref, ln1g_ref, ln1b_ref,
     w1_ref, b1_ref, w2_ref, b2_ref, ln2g_ref, ln2b_ref,
     wp_ref, bp_ref, wh_ref, bh_ref) = refs[:20]
    if output_attentions:
        xo_ref, p_ref, heads_ref, x_scr = refs[20:]
    else:
        xo_ref, heads_ref, x_scr = refs[20:]
        p_ref = None

    l = pl.program_id(1)
    NH, Dh = num_heads, head_dim
    H = NH * Dh

    def layernorm(h, g, b):
        mean = jnp.mean(h, axis=-1, keepdims=True)
        var = jnp.mean((h - mean) ** 2, axis=-1, keepdims=True)
        return (h - mean) * jax.lax.rsqrt(var + eps) * g + b

    # l == 0: embedding LayerNorm seeds the VMEM-resident activation carry.
    @pl.when(l == 0)
    def _():
        x_scr[...] = layernorm(emb_ref[0], eg_ref[...], eb_ref[...])

    x = x_scr[...]                                          # (S, H) f32
    S = x.shape[0]
    x_bf = x.astype(jnp.bfloat16)

    # ---- attention: head-batched QKV / scores / context / out-projection ----
    # wqkv is (3*NH, H, Dh) = [q_h0..q_h{NH-1}, k_*, v_*]; the Q slices (weights+bias)
    # are pre-scaled by 1/sqrt(Dh) in the wrapper, so no per-element scaling here.
    xb = jnp.broadcast_to(x_bf[None, :, :], (3 * NH, S, H))
    qkv = jax.lax.dot_general(xb, wqkv_ref[0], (((2,), (1,)), ((0,), (0,))),
                              preferred_element_type=jnp.float32)
    qkv = qkv + bqkv_ref[0]                                 # (3NH, S, Dh)
    q3 = qkv[0:NH].astype(jnp.bfloat16)
    k3 = qkv[NH:2 * NH].astype(jnp.bfloat16)
    v3 = qkv[2 * NH:3 * NH].astype(jnp.bfloat16)

    s = jax.lax.dot_general(q3, k3, (((2,), (2,)), ((0,), (0,))),
                            preferred_element_type=jnp.float32)        # (NH, S, S)
    s = s + mask_ref[0]                                     # additive key mask (1, S)
    s = s - jnp.max(s, axis=-1, keepdims=True)
    e = jnp.exp(s)
    p = e / jnp.sum(e, axis=-1, keepdims=True)              # exact softmax (probs are outputs)
    if output_attentions:
        p_ref[0] = p.astype(p_ref.dtype)                    # ONE store for all heads

    ctx = jax.lax.dot_general(p.astype(jnp.bfloat16), v3, (((2,), (1,)), ((0,), (0,))),
                              preferred_element_type=jnp.float32)      # (NH, S, Dh)
    outh = jax.lax.dot_general(ctx.astype(jnp.bfloat16), wo_ref[0],
                               (((2,), (1,)), ((0,), (0,))),
                               preferred_element_type=jnp.float32)     # (NH, S, H)
    attn = jnp.sum(outh, axis=0) + bo_ref[0]                # (S, H)

    x1 = layernorm(attn + x, ln1g_ref[0], ln1b_ref[0])

    # ---- feed-forward ----
    h1 = jnp.dot(x1.astype(jnp.bfloat16), w1_ref[0],
                 preferred_element_type=jnp.float32) + b1_ref[0]
    # TODO(synk): HF BERT uses exact erf-GELU; tanh-approx GELU (EUP tanh) is used here.
    h1 = jax.nn.gelu(h1, approximate=True)
    h2 = jnp.dot(h1.astype(jnp.bfloat16), w2_ref[0],
                 preferred_element_type=jnp.float32) + b2_ref[0]
    x2 = layernorm(h2 + x1, ln2g_ref[0], ln2b_ref[0])

    x_scr[...] = x2                                         # carry to layer l + 1

    # ---- final layer: hidden-state writeback + pooler + fused heads ----
    @pl.when(l == num_layers - 1)
    def _():
        xo_ref[0] = x2.astype(xo_ref.dtype)
        cls = x2[0:1, :].astype(jnp.bfloat16)               # (1, H) CLS token
        pooled = jnp.tanh(jnp.dot(cls, wp_ref[...],
                                  preferred_element_type=jnp.float32) + bp_ref[...])
        heads = jnp.dot(pooled.astype(jnp.bfloat16), wh_ref[...],
                        preferred_element_type=jnp.float32) + bh_ref[...]
        heads_ref[0] = heads.astype(heads_ref.dtype)        # lane-dense (1, Npad) store


def encoder_pooler_heads(emb_sum, mask_bias, p, cfg, output_attentions=True, eps=1e-12):
    """Whole encoder + pooler + fused heads in ONE pallas_call.

    emb_sum:   (B, S, H) f32 word + position + token-type embeddings (pre-LayerNorm)
    mask_bias: (B, 1, S) f32 additive attention mask
    Returns (last_hidden (B,S,H), probs (B, L*NH, S, S) or None, heads (B, 1, Npad)).
    """
    B, S, H = emb_sum.shape
    L = cfg["num_layers"]
    NH, Dh = cfg["num_heads"], cfg["head_dim"]
    I = cfg["intermediate"]
    Npad = p["wh"].shape[1]

    batch3 = lambda b, l: (b, 0, 0)
    const2 = lambda b, l: (0, 0)
    layer3 = lambda b, l: (l, 0, 0)
    layer4 = lambda b, l: (l, 0, 0, 0)

    in_specs = [
        pl.BlockSpec((1, S, H), batch3),                    # emb_sum
        pl.BlockSpec((1, 1, S), batch3),                    # mask_bias
        pl.BlockSpec((1, H), const2),                       # emb_ln_g
        pl.BlockSpec((1, H), const2),                       # emb_ln_b
        pl.BlockSpec((1, 3 * NH, H, Dh), layer4),           # wqkv (bf16, Q pre-scaled)
        pl.BlockSpec((1, 3 * NH, 1, Dh), layer4),           # bqkv
        pl.BlockSpec((1, NH, Dh, H), layer4),               # wo  (head-split)
        pl.BlockSpec((1, 1, H), layer3),                    # bo
        pl.BlockSpec((1, 1, H), layer3),                    # ln1_g
        pl.BlockSpec((1, 1, H), layer3),                    # ln1_b
        pl.BlockSpec((1, H, I), layer3),                    # w1
        pl.BlockSpec((1, 1, I), layer3),                    # b1
        pl.BlockSpec((1, I, H), layer3),                    # w2
        pl.BlockSpec((1, 1, H), layer3),                    # b2
        pl.BlockSpec((1, 1, H), layer3),                    # ln2_g
        pl.BlockSpec((1, 1, H), layer3),                    # ln2_b
        pl.BlockSpec((H, H), const2),                       # wp (pooler)
        pl.BlockSpec((1, H), const2),                       # bp
        pl.BlockSpec((H, Npad), const2),                    # wh (class|domain|contrast, padded)
        pl.BlockSpec((1, Npad), const2),                    # bh
    ]

    out_shape = [jax.ShapeDtypeStruct((B, S, H), jnp.float32)]
    out_specs = [pl.BlockSpec((1, S, H), batch3)]
    if output_attentions:
        out_shape.append(jax.ShapeDtypeStruct((B, L * NH, S, S), jnp.float32))
        out_specs.append(pl.BlockSpec((1, NH, S, S), lambda b, l: (b, l, 0, 0)))
    out_shape.append(jax.ShapeDtypeStruct((B, 1, Npad), jnp.float32))
    out_specs.append(pl.BlockSpec((1, 1, Npad), batch3))

    kernel = functools.partial(
        _encoder_kernel, num_heads=NH, head_dim=Dh, num_layers=L, eps=eps,
        output_attentions=output_attentions)

    # TODO(synk): at real bert-base dims (H=768, I=3072, S=512) re-derive the VMEM budget
    # (v7x has 64 MiB physical / 32 MiB default scoped), set vmem_limit_bytes and/or K-tile
    # the FFN weights; at these toy dims everything fits with large margin.
    outs = pl.pallas_call(
        kernel,
        out_shape=tuple(out_shape),
        grid=(B, L),
        in_specs=in_specs,
        out_specs=tuple(out_specs),
        scratch_shapes=[pltpu.VMEM((S, H), jnp.float32)],   # x carried across layers
        compiler_params=pltpu.CompilerParams(
            dimension_semantics=("parallel", "arbitrary")),
    )(emb_sum, mask_bias, p["emb_ln_g"], p["emb_ln_b"],
      p["wqkv"], p["bqkv"], p["wo"], p["bo"], p["ln1_g"], p["ln1_b"],
      p["w1"], p["b1"], p["w2"], p["b2"], p["ln2_g"], p["ln2_b"],
      p["wp"], p["bp"], p["wh"], p["bh"])

    if output_attentions:
        last_hidden, probs, heads = outs
    else:
        last_hidden, heads = outs
        probs = None
    return last_hidden, probs, heads


# ---------------------------- plain-JAX glue ---------------------------------

def cross_entropy(logits, labels):
    """Mean CE (torch.nn.CrossEntropyLoss default) — plain JAX; XLA fuses the ~10 FLOPs."""
    logp = jax.nn.log_softmax(logits.astype(jnp.float32), axis=-1)
    nll = -jnp.take_along_axis(logp, labels.reshape(-1, 1).astype(jnp.int32), axis=-1)
    return jnp.mean(nll)


def init_params(key, cfg):
    """Synthetic deterministic params, stored directly in the kernel's stacked layout."""
    std = 0.02
    H, I, L = cfg["hidden"], cfg["intermediate"], cfg["num_layers"]
    NH, Dh = cfg["num_heads"], cfg["head_dim"]
    NL = cfg["num_labels"]
    scale = 1.0 / math.sqrt(Dh)
    counter = [0]

    def nk():
        counter[0] += 1
        return jax.random.fold_in(key, counter[0])

    def w(shape):
        return jax.random.normal(nk(), shape, jnp.float32) * std

    def split_heads(m):                                  # (H, H) -> (NH, H, Dh)
        return m.reshape(H, NH, Dh).transpose(1, 0, 2)

    p = {}
    p["word_emb"] = w((cfg["vocab_size"], H))
    p["pos_emb"] = w((cfg["max_position"], H))
    p["type_emb"] = w((cfg["type_vocab"], H))
    p["emb_ln_g"] = jnp.ones((1, H), jnp.float32)
    p["emb_ln_b"] = jnp.zeros((1, H), jnp.float32)

    wqkv_l, bqkv_l, wo_l, bo_l = [], [], [], []
    ln1g_l, ln1b_l, w1_l, b1_l = [], [], [], []
    w2_l, b2_l, ln2g_l, ln2b_l = [], [], [], []
    for _ in range(L):
        wq, wk, wv = w((H, H)), w((H, H)), w((H, H))
        # Q weights (and biases, if nonzero) pre-scaled by 1/sqrt(Dh).
        wqkv_l.append(jnp.concatenate(
            [split_heads(wq) * scale, split_heads(wk), split_heads(wv)], axis=0))
        bqkv_l.append(jnp.zeros((3 * NH, 1, Dh), jnp.float32))
        wo_l.append(w((H, H)).reshape(NH, Dh, H))
        bo_l.append(jnp.zeros((1, H), jnp.float32))
        ln1g_l.append(jnp.ones((1, H), jnp.float32))
        ln1b_l.append(jnp.zeros((1, H), jnp.float32))
        w1_l.append(w((H, I)))
        b1_l.append(jnp.zeros((1, I), jnp.float32))
        w2_l.append(w((I, H)))
        b2_l.append(jnp.zeros((1, H), jnp.float32))
        ln2g_l.append(jnp.ones((1, H), jnp.float32))
        ln2b_l.append(jnp.zeros((1, H), jnp.float32))

    p["wqkv"] = jnp.stack(wqkv_l).astype(jnp.bfloat16)    # (L, 3NH, H, Dh)
    p["bqkv"] = jnp.stack(bqkv_l)                         # (L, 3NH, 1, Dh)
    p["wo"] = jnp.stack(wo_l).astype(jnp.bfloat16)        # (L, NH, Dh, H)
    p["bo"] = jnp.stack(bo_l)                             # (L, 1, H)
    p["ln1_g"] = jnp.stack(ln1g_l)
    p["ln1_b"] = jnp.stack(ln1b_l)
    p["w1"] = jnp.stack(w1_l).astype(jnp.bfloat16)        # (L, H, I)
    p["b1"] = jnp.stack(b1_l)
    p["w2"] = jnp.stack(w2_l).astype(jnp.bfloat16)        # (L, I, H)
    p["b2"] = jnp.stack(b2_l)
    p["ln2_g"] = jnp.stack(ln2g_l)
    p["ln2_b"] = jnp.stack(ln2b_l)

    # Pooler.
    p["wp"] = w((H, H)).astype(jnp.bfloat16)
    p["bp"] = jnp.zeros((1, H), jnp.float32)

    # Fused heads: [class (NL) | domain (2) | contrast_MLP (H)], zero-padded to a
    # multiple of 128 output lanes for an unmasked, lane-dense store.
    n_raw = NL + 2 + H
    n_pad = ((n_raw + 127) // 128) * 128
    wh = jnp.zeros((H, n_pad), jnp.float32)
    wh = wh.at[:, :NL].set(w((H, NL)))
    wh = wh.at[:, NL:NL + 2].set(w((H, 2)))
    wh = wh.at[:, NL + 2:NL + 2 + H].set(w((H, H)))
    p["wh"] = wh.astype(jnp.bfloat16)
    p["bh"] = jnp.zeros((1, n_pad), jnp.float32)
    return p


def bert_adv_contrast_forward(params, cfg, input_ids, attention_mask,
                              class_labels=None, domain_labels=None,
                              output_attentions=True):
    B, S = input_ids.shape
    H = cfg["hidden"]
    NH = cfg["num_heads"]
    NL = cfg["num_labels"]
    L = cfg["num_layers"]

    # Embedding gather + sum is XLA glue (fused for free); LayerNorm happens in-kernel (l==0).
    word = jnp.take(params["word_emb"], input_ids, axis=0)               # (B, S, H)
    pos_type = params["pos_emb"][:S] + params["type_emb"][0][None, :]    # (S, H); token_type=0
    emb_sum = word + pos_type[None, :, :]

    # Additive attention-mask bias (HF convention): 0 where attended, -10000 where masked.
    mask_bias = ((1.0 - attention_mask.astype(jnp.float32)) * -10000.0).reshape(B, 1, S)

    last_hidden_state, probs, heads = encoder_pooler_heads(
        emb_sum, mask_bias, params, cfg, output_attentions=output_attentions)

    heads = heads[:, 0, :]                                                # (B, Npad)
    class_logits = heads[:, :NL]
    domain_logits = heads[:, NL:NL + 2]
    z = heads[:, NL + 2:NL + 2 + H]

    if output_attentions:
        probs = probs.reshape(B, L, NH, S, S)
        all_attentions = tuple(probs[:, l] for l in range(L))
    else:
        all_attentions = None

    # (dropout in the torch module is identity in eval mode)
    class_loss = None
    if class_labels is not None:
        class_loss = cross_entropy(class_logits, class_labels.reshape(-1))
    domain_loss = None
    if domain_labels is not None:
        domain_loss = cross_entropy(domain_logits, domain_labels.reshape(-1))

    return (class_loss, class_logits, domain_loss, domain_logits,
            last_hidden_state, all_attentions, z)


# ----------------------------------- main ------------------------------------

if __name__ == "__main__":
    key = jax.random.PRNGKey(0)
    k_param, k_ids, k_cls, k_dom = jax.random.split(key, 4)

    B, S = 2, 8
    params = init_params(k_param, CFG)

    input_ids = jax.random.randint(k_ids, (B, S), 0, CFG["vocab_size"], dtype=jnp.int32)
    attention_mask = jnp.ones((B, S), dtype=jnp.int32)
    class_labels = jax.random.randint(k_cls, (B,), 0, CFG["num_labels"], dtype=jnp.int32)
    domain_labels = jax.random.randint(k_dom, (B,), 0, 2, dtype=jnp.int32)

    @jax.jit
    def fwd(p, ids, mask, cls_lab, dom_lab):
        return bert_adv_contrast_forward(p, CFG, ids, mask, cls_lab, dom_lab)

    outs = fwd(params, input_ids, attention_mask, class_labels, domain_labels)
    (class_loss, class_logits, domain_loss, domain_logits,
     last_hidden_state, attentions, z) = outs

    for o in (class_loss, class_logits, domain_loss, domain_logits,
              last_hidden_state, z, *attentions):
        jax.block_until_ready(o)

    print("KERNEL_OK")
</pallas_src>

<mosaic_0001>
module attributes {stable_mosaic.version = 11 : i64} {
  func.func @_encoder_kernel(%arg0: i32, %arg1: i32, %arg2: memref<1x8x128xf32, #tpu.memory_space<vmem>>, %arg3: memref<1x1x8xf32, #tpu.memory_space<vmem>>, %arg4: memref<1x128xf32, #tpu.memory_space<vmem>>, %arg5: memref<1x128xf32, #tpu.memory_space<vmem>>, %arg6: memref<1x12x128x32xbf16, #tpu.memory_space<vmem>>, %arg7: memref<1x12x1x32xf32, #tpu.memory_space<vmem>>, %arg8: memref<1x4x32x128xbf16, #tpu.memory_space<vmem>>, %arg9: memref<1x1x128xf32, #tpu.memory_space<vmem>>, %arg10: memref<1x1x128xf32, #tpu.memory_space<vmem>>, %arg11: memref<1x1x128xf32, #tpu.memory_space<vmem>>, %arg12: memref<1x128x256xbf16, #tpu.memory_space<vmem>>, %arg13: memref<1x1x256xf32, #tpu.memory_space<vmem>>, %arg14: memref<1x256x128xbf16, #tpu.memory_space<vmem>>, %arg15: memref<1x1x128xf32, #tpu.memory_space<vmem>>, %arg16: memref<1x1x128xf32, #tpu.memory_space<vmem>>, %arg17: memref<1x1x128xf32, #tpu.memory_space<vmem>>, %arg18: memref<128x128xbf16, #tpu.memory_space<vmem>>, %arg19: memref<1x128xf32, #tpu.memory_space<vmem>>, %arg20: memref<128x256xbf16, #tpu.memory_space<vmem>>, %arg21: memref<1x256xf32, #tpu.memory_space<vmem>>, %arg22: memref<1x8x128xf32, #tpu.memory_space<vmem>>, %arg23: memref<1x4x8x8xf32, #tpu.memory_space<vmem>>, %arg24: memref<1x1x256xf32, #tpu.memory_space<vmem>>, %arg25: memref<8x128xf32, #tpu.memory_space<vmem>>) attributes {dimension_semantics = [#tpu.dimension_semantics<parallel>, #tpu.dimension_semantics<arbitrary>], iteration_bounds = array<i64: 2, 2>, scalar_prefetch = 0 : i64, scratch_operands = 1 : i64, tpu.core_type = #tpu.core_type<tc>, window_params = [{transform_indices = @transform_0, window_bounds = array<i64: 1, 8, 128>}, {transform_indices = @transform_1, window_bounds = array<i64: 1, 1, 8>}, {pipeline_mode = #tpu.pipeline_mode<synchronous>, transform_indices = @transform_2, window_bounds = array<i64: 1, 128>}, {pipeline_mode = #tpu.pipeline_mode<synchronous>, transform_indices = @transform_3, window_bounds = array<i64: 1, 128>}, {transform_indices = @transform_4, window_bounds = array<i64: 1, 12, 128, 32>}, {transform_indices = @transform_5, window_bounds = array<i64: 1, 12, 1, 32>}, {transform_indices = @transform_6, window_bounds = array<i64: 1, 4, 32, 128>}, {transform_indices = @transform_7, window_bounds = array<i64: 1, 1, 128>}, {transform_indices = @transform_8, window_bounds = array<i64: 1, 1, 128>}, {transform_indices = @transform_9, window_bounds = array<i64: 1, 1, 128>}, {transform_indices = @transform_10, window_bounds = array<i64: 1, 128, 256>}, {transform_indices = @transform_11, window_bounds = array<i64: 1, 1, 256>}, {transform_indices = @transform_12, window_bounds = array<i64: 1, 256, 128>}, {transform_indices = @transform_13, window_bounds = array<i64: 1, 1, 128>}, {transform_indices = @transform_14, window_bounds = array<i64: 1, 1, 128>}, {transform_indices = @transform_15, window_bounds = array<i64: 1, 1, 128>}, {pipeline_mode = #tpu.pipeline_mode<synchronous>, transform_indices = @transform_16, window_bounds = array<i64: 128, 128>}, {pipeline_mode = #tpu.pipeline_mode<synchronous>, transform_indices = @transform_17, window_bounds = array<i64: 1, 128>}, {pipeline_mode = #tpu.pipeline_mode<synchronous>, transform_indices = @transform_18, window_bounds = array<i64: 128, 256>}, {pipeline_mode = #tpu.pipeline_mode<synchronous>, transform_indices = @transform_19, window_bounds = array<i64: 1, 256>}, {transform_indices = @transform_20, window_bounds = array<i64: 1, 8, 128>}, {transform_indices = @transform_21, window_bounds = array<i64: 1, 4, 8, 8>}, {transform_indices = @transform_22, window_bounds = array<i64: 1, 1, 256>}]} {
    %c0_i32 = arith.constant 0 : i32
    %0 = arith.cmpi eq, %arg1, %c0_i32 : i32
    %1 = arith.extui %0 : i1 to i32
    %c0_i32_0 = arith.constant 0 : i32
    %2 = arith.cmpi ne, %1, %c0_i32_0 : i32
    scf.if %2 {
      %c0_73 = arith.constant 0 : index
      %c0_74 = arith.constant 0 : index
      %c0_75 = arith.constant 0 : index
      %137 = vector.load %arg2[%c0_73, %c0_74, %c0_75] : memref<1x8x128xf32, #tpu.memory_space<vmem>>, vector<1x8x128xf32>
      %138 = vector.shape_cast %137 : vector<1x8x128xf32> to vector<8x128xf32>
      %c0_76 = arith.constant 0 : index
      %c0_77 = arith.constant 0 : index
      %139 = vector.load %arg4[%c0_76, %c0_77] : memref<1x128xf32, #tpu.memory_space<vmem>>, vector<1x128xf32>
      %c0_78 = arith.constant 0 : index
      %c0_79 = arith.constant 0 : index
      %140 = vector.load %arg5[%c0_78, %c0_79] : memref<1x128xf32, #tpu.memory_space<vmem>>, vector<1x128xf32>
      %cst_80 = arith.constant dense<0.000000e+00> : vector<8xf32>
      %141 = vector.multi_reduction <add>, %138, %cst_80 [1] : vector<8x128xf32> to vector<8xf32>
      %142 = vector.shape_cast %141 : vector<8xf32> to vector<8x1xf32>
      %cst_81 = arith.constant 1.280000e+02 : f32
      %143 = vector.broadcast %cst_81 : f32 to vector<8x1xf32>
      %144 = arith.divf %142, %143 : vector<8x1xf32>
      %145 = vector.broadcast %144 : vector<8x1xf32> to vector<8x128xf32>
      %146 = arith.subf %138, %145 : vector<8x128xf32>
      %147 = arith.mulf %146, %146 : vector<8x128xf32>
      %cst_82 = arith.constant dense<0.000000e+00> : vector<8xf32>
      %148 = vector.multi_reduction <add>, %147, %cst_82 [1] : vector<8x128xf32> to vector<8xf32>
      %149 = vector.shape_cast %148 : vector<8xf32> to vector<8x1xf32>
      %cst_83 = arith.constant 1.280000e+02 : f32
      %150 = vector.broadcast %cst_83 : f32 to vector<8x1xf32>
      %151 = arith.divf %149, %150 : vector<8x1xf32>
      %152 = vector.broadcast %144 : vector<8x1xf32> to vector<8x128xf32>
      %153 = arith.subf %138, %152 : vector<8x128xf32>
      %cst_84 = arith.constant 9.99999996E-13 : f32
      %154 = vector.broadcast %cst_84 : f32 to vector<8x1xf32>
      %155 = arith.addf %151, %154 : vector<8x1xf32>
      %156 = math.rsqrt %155 : vector<8x1xf32>
      %157 = vector.broadcast %156 : vector<8x1xf32> to vector<8x128xf32>
      %158 = arith.mulf %153, %157 : vector<8x128xf32>
      %159 = vector.broadcast %139 : vector<1x128xf32> to vector<8x128xf32>
      %160 = arith.mulf %158, %159 : vector<8x128xf32>
      %161 = vector.broadcast %140 : vector<1x128xf32> to vector<8x128xf32>
      %162 = arith.addf %160, %161 : vector<8x128xf32>
      %c0_85 = arith.constant 0 : index
      %c0_86 = arith.constant 0 : index
      %163 = vector.load %arg25[%c0_85, %c0_86] : memref<8x128xf32, #tpu.memory_space<vmem>>, vector<8x128xf32>
      tpu.vector_store %arg25[%c0_85, %c0_86], %162 {strides = array<i32>} : memref<8x128xf32, #tpu.memory_space<vmem>>, vector<8x128xf32>,
    } else {
    }
    %c0 = arith.constant 0 : index
    %c0_1 = arith.constant 0 : index
    %3 = vector.load %arg25[%c0, %c0_1] : memref<8x128xf32, #tpu.memory_space<vmem>>, vector<8x128xf32>
    %4 = arith.truncf %3 : vector<8x128xf32> to vector<8x128xbf16>
    %5 = vector.shape_cast %4 : vector<8x128xbf16> to vector<1x8x128xbf16>
    %6 = vector.shape_cast %5 : vector<1x8x128xbf16> to vector<1x8x128xbf16>
    %7 = vector.broadcast %6 : vector<1x8x128xbf16> to vector<12x8x128xbf16>
    %c0_2 = arith.constant 0 : index
    %c0_3 = arith.constant 0 : index
    %c0_4 = arith.constant 0 : index
    %c0_5 = arith.constant 0 : index
    %8 = vector.load %arg6[%c0_2, %c0_3, %c0_4, %c0_5] : memref<1x12x128x32xbf16, #tpu.memory_space<vmem>>, vector<1x12x128x32xbf16>
    %9 = vector.shape_cast %8 : vector<1x12x128x32xbf16> to vector<12x128x32xbf16>
    %cst = arith.constant dense<0.000000e+00> : vector<12x8x32xf32>
    %10 = tpu.matmul %7, %9, %cst {dimension_numbers = #tpu.dot_dimension_numbers<[2], [1], [1], [2], [0, 0, 0, 1, 1, 2], [0], [0]>} : vector<12x8x128xbf16>, vector<12x128x32xbf16>, vector<12x8x32xf32> -> vector<12x8x32xf32>
    %c0_6 = arith.constant 0 : index
    %c0_7 = arith.constant 0 : index
    %c0_8 = arith.constant 0 : index
    %c0_9 = arith.constant 0 : index
    %11 = vector.load %arg7[%c0_6, %c0_7, %c0_8, %c0_9] : memref<1x12x1x32xf32, #tpu.memory_space<vmem>>, vector<1x12x1x32xf32>
    %12 = vector.shape_cast %11 : vector<1x12x1x32xf32> to vector<12x1x32xf32>
    %13 = vector.broadcast %12 : vector<12x1x32xf32> to vector<12x8x32xf32>
    %14 = arith.addf %10, %13 : vector<12x8x32xf32>
    %15 = vector.extract_strided_slice %14 {offsets = [0, 0, 0], sizes = [4, 8, 32], strides = [1, 1, 1]} : vector<12x8x32xf32> to vector<4x8x32xf32>
    %16 = arith.truncf %15 : vector<4x8x32xf32> to vector<4x8x32xbf16>
    %17 = vector.extract_strided_slice %14 {offsets = [4, 0, 0], sizes = [4, 8, 32], strides = [1, 1, 1]} : vector<12x8x32xf32> to vector<4x8x32xf32>
    %18 = arith.truncf %17 : vector<4x8x32xf32> to vector<4x8x32xbf16>
    %19 = vector.extract_strided_slice %14 {offsets = [8, 0, 0], sizes = [4, 8, 32], strides = [1, 1, 1]} : vector<12x8x32xf32> to vector<4x8x32xf32>
    %20 = arith.truncf %19 : vector<4x8x32xf32> to vector<4x8x32xbf16>
    %cst_10 = arith.constant dense<0.000000e+00> : vector<4x8x8xf32>
    %21 = tpu.matmul %16, %18, %cst_10 {dimension_numbers = #tpu.dot_dimension_numbers<[2], [2], [1], [1], [0, 0, 0, 1, 1, 1], [0], [0]>} : vector<4x8x32xbf16>, vector<4x8x32xbf16>, vector<4x8x8xf32> -> vector<4x8x8xf32>
    %c0_11 = arith.constant 0 : index
    %c0_12 = arith.constant 0 : index
    %c0_13 = arith.constant 0 : index
    %22 = vector.load %arg3[%c0_11, %c0_12, %c0_13] : memref<1x1x8xf32, #tpu.memory_space<vmem>>, vector<1x1x8xf32>
    %23 = vector.shape_cast %22 : vector<1x1x8xf32> to vector<1x8xf32>
    %24 = vector.shape_cast %23 : vector<1x8xf32> to vector<1x1x8xf32>
    %25 = vector.broadcast %24 : vector<1x1x8xf32> to vector<4x8x8xf32>
    %26 = arith.addf %21, %25 : vector<4x8x8xf32>
    %cst_14 = arith.constant dense<0xFF800000> : vector<4x8xf32>
    %27 = vector.multi_reduction <maximumf>, %26, %cst_14 [2] : vector<4x8x8xf32> to vector<4x8xf32>
    %28 = vector.shape_cast %27 : vector<4x8xf32> to vector<4x8x1xf32>
    %29 = vector.broadcast %28 : vector<4x8x1xf32> to vector<4x8x8xf32>
    %30 = arith.subf %26, %29 : vector<4x8x8xf32>
    %31 = math.exp %30 : vector<4x8x8xf32>
    %cst_15 = arith.constant dense<0.000000e+00> : vector<4x8xf32>
    %32 = vector.multi_reduction <add>, %31, %cst_15 [2] : vector<4x8x8xf32> to vector<4x8xf32>
    %33 = vector.shape_cast %32 : vector<4x8xf32> to vector<4x8x1xf32>
    %34 = vector.broadcast %33 : vector<4x8x1xf32> to vector<4x8x8xf32>
    %35 = arith.divf %31, %34 : vector<4x8x8xf32>
    %c0_16 = arith.constant 0 : index
    %c0_17 = arith.constant 0 : index
    %c0_18 = arith.constant 0 : index
    %c0_19 = arith.constant 0 : index
    %36 = vector.load %arg23[%c0_16, %c0_17, %c0_18, %c0_19] : memref<1x4x8x8xf32, #tpu.memory_space<vmem>>, vector<1x4x8x8xf32>
    %37 = vector.shape_cast %36 : vector<1x4x8x8xf32> to vector<4x8x8xf32>
    %38 = vector.shape_cast %35 : vector<4x8x8xf32> to vector<1x4x8x8xf32>
    tpu.vector_store %arg23[%c0_16, %c0_17, %c0_18, %c0_19], %38 {strides = array<i32>} : memref<1x4x8x8xf32, #tpu.memory_space<vmem>>, vector<1x4x8x8xf32>,
    %39 = arith.truncf %35 : vector<4x8x8xf32> to vector<4x8x8xbf16>
    %cst_20 = arith.constant dense<0.000000e+00> : vector<4x8x32xf32>
    %40 = tpu.matmul %39, %20, %cst_20 {dimension_numbers = #tpu.dot_dimension_numbers<[2], [1], [1], [2], [0, 0, 0, 1, 1, 2], [0], [0]>} : vector<4x8x8xbf16>, vector<4x8x32xbf16>, vector<4x8x32xf32> -> vector<4x8x32xf32>
    %41 = arith.truncf %40 : vector<4x8x32xf32> to vector<4x8x32xbf16>
    %c0_21 = arith.constant 0 : index
    %c0_22 = arith.constant 0 : index
    %c0_23 = arith.constant 0 : index
    %c0_24 = arith.constant 0 : index
    %42 = vector.load %arg8[%c0_21, %c0_22, %c0_23, %c0_24] : memref<1x4x32x128xbf16, #tpu.memory_space<vmem>>, vector<1x4x32x128xbf16>
    %43 = vector.shape_cast %42 : vector<1x4x32x128xbf16> to vector<4x32x128xbf16>
    %cst_25 = arith.constant dense<0.000000e+00> : vector<4x8x128xf32>
    %44 = tpu.matmul %41, %43, %cst_25 {dimension_numbers = #tpu.dot_dimension_numbers<[2], [1], [1], [2], [0, 0, 0, 1, 1, 2], [0], [0]>} : vector<4x8x32xbf16>, vector<4x32x128xbf16>, vector<4x8x128xf32> -> vector<4x8x128xf32>
    %cst_26 = arith.constant dense<0.000000e+00> : vector<8x128xf32>
    %45 = vector.multi_reduction <add>, %44, %cst_26 [0] : vector<4x8x128xf32> to vector<8x128xf32>
    %c0_27 = arith.constant 0 : index
    %c0_28 = arith.constant 0 : index
    %c0_29 = arith.constant 0 : index
    %46 = vector.load %arg9[%c0_27, %c0_28, %c0_29] : memref<1x1x128xf32, #tpu.memory_space<vmem>>, vector<1x1x128xf32>
    %47 = vector.shape_cast %46 : vector<1x1x128xf32> to vector<1x128xf32>
    %48 = vector.broadcast %47 : vector<1x128xf32> to vector<8x128xf32>
    %49 = arith.addf %45, %48 : vector<8x128xf32>
    %50 = arith.addf %49, %3 : vector<8x128xf32>
    %c0_30 = arith.constant 0 : index
    %c0_31 = arith.constant 0 : index
    %c0_32 = arith.constant 0 : index
    %51 = vector.load %arg10[%c0_30, %c0_31, %c0_32] : memref<1x1x128xf32, #tpu.memory_space<vmem>>, vector<1x1x128xf32>
    %52 = vector.shape_cast %51 : vector<1x1x128xf32> to vector<1x128xf32>
    %c0_33 = arith.constant 0 : index
    %c0_34 = arith.constant 0 : index
    %c0_35 = arith.constant 0 : index
    %53 = vector.load %arg11[%c0_33, %c0_34, %c0_35] : memref<1x1x128xf32, #tpu.memory_space<vmem>>, vector<1x1x128xf32>
    %54 = vector.shape_cast %53 : vector<1x1x128xf32> to vector<1x128xf32>
    %cst_36 = arith.constant dense<0.000000e+00> : vector<8xf32>
    %55 = vector.multi_reduction <add>, %50, %cst_36 [1] : vector<8x128xf32> to vector<8xf32>
    %56 = vector.shape_cast %55 : vector<8xf32> to vector<8x1xf32>
    %cst_37 = arith.constant 1.280000e+02 : f32
    %57 = vector.broadcast %cst_37 : f32 to vector<8x1xf32>
    %58 = arith.divf %56, %57 : vector<8x1xf32>
    %59 = vector.broadcast %58 : vector<8x1xf32> to vector<8x128xf32>
    %60 = arith.subf %50, %59 : vector<8x128xf32>
    %61 = arith.mulf %60, %60 : vector<8x128xf32>
    %cst_38 = arith.constant dense<0.000000e+00> : vector<8xf32>
    %62 = vector.multi_reduction <add>, %61, %cst_38 [1] : vector<8x128xf32> to vector<8xf32>
    %63 = vector.shape_cast %62 : vector<8xf32> to vector<8x1xf32>
    %cst_39 = arith.constant 1.280000e+02 : f32
    %64 = vector.broadcast %cst_39 : f32 to vector<8x1xf32>
    %65 = arith.divf %63, %64 : vector<8x1xf32>
    %66 = vector.broadcast %58 : vector<8x1xf32> to vector<8x128xf32>
    %67 = arith.subf %50, %66 : vector<8x128xf32>
    %cst_40 = arith.constant 9.99999996E-13 : f32
    %68 = vector.broadcast %cst_40 : f32 to vector<8x1xf32>
    %69 = arith.addf %65, %68 : vector<8x1xf32>
    %70 = math.rsqrt %69 : vector<8x1xf32>
    %71 = vector.broadcast %70 : vector<8x1xf32> to vector<8x128xf32>
    %72 = arith.mulf %67, %71 : vector<8x128xf32>
    %73 = vector.broadcast %52 : vector<1x128xf32> to vector<8x128xf32>
    %74 = arith.mulf %72, %73 : vector<8x128xf32>
    %75 = vector.broadcast %54 : vector<1x128xf32> to vector<8x128xf32>
    %76 = arith.addf %74, %75 : vector<8x128xf32>
    %77 = arith.truncf %76 : vector<8x128xf32> to vector<8x128xbf16>
    %c0_41 = arith.constant 0 : index
    %c0_42 = arith.constant 0 : index
    %c0_43 = arith.constant 0 : index
    %78 = vector.load %arg12[%c0_41, %c0_42, %c0_43] : memref<1x128x256xbf16, #tpu.memory_space<vmem>>, vector<1x128x256xbf16>
    %79 = vector.shape_cast %78 : vector<1x128x256xbf16> to vector<128x256xbf16>
    %cst_44 = arith.constant dense<0.000000e+00> : vector<8x256xf32>
    %80 = tpu.matmul %77, %79, %cst_44 {dimension_numbers = #tpu.dot_dimension_numbers<[1], [0], [0], [1], [0, 0, 1, 1], [], []>} : vector<8x128xbf16>, vector<128x256xbf16>, vector<8x256xf32> -> vector<8x256xf32>
    %c0_45 = arith.constant 0 : index
    %c0_46 = arith.constant 0 : index
    %c0_47 = arith.constant 0 : index
    %81 = vector.load %arg13[%c0_45, %c0_46, %c0_47] : memref<1x1x256xf32, #tpu.memory_space<vmem>>, vector<1x1x256xf32>
    %82 = vector.shape_cast %81 : vector<1x1x256xf32> to vector<1x256xf32>
    %83 = vector.broadcast %82 : vector<1x256xf32> to vector<8x256xf32>
    %84 = arith.addf %80, %83 : vector<8x256xf32>
    %85 = arith.mulf %84, %84 : vector<8x256xf32>
    %86 = arith.mulf %84, %85 : vector<8x256xf32>
    %cst_48 = arith.constant 4.471500e-02 : f32
    %87 = vector.broadcast %cst_48 : f32 to vector<8x256xf32>
    %88 = arith.mulf %87, %86 : vector<8x256xf32>
    %89 = arith.addf %84, %88 : vector<8x256xf32>
    %cst_49 = arith.constant 0.797884583 : f32
    %90 = vector.broadcast %cst_49 : f32 to vector<8x256xf32>
    %91 = arith.mulf %90, %89 : vector<8x256xf32>
    %92 = math.tanh %91 : vector<8x256xf32>
    %cst_50 = arith.constant 1.000000e+00 : f32
    %93 = vector.broadcast %cst_50 : f32 to vector<8x256xf32>
    %94 = arith.addf %93, %92 : vector<8x256xf32>
    %cst_51 = arith.constant 5.000000e-01 : f32
    %95 = vector.broadcast %cst_51 : f32 to vector<8x256xf32>
    %96 = arith.mulf %95, %94 : vector<8x256xf32>
    %97 = arith.mulf %84, %96 : vector<8x256xf32>
    %98 = arith.truncf %97 : vector<8x256xf32> to vector<8x256xbf16>
    %c0_52 = arith.constant 0 : index
    %c0_53 = arith.constant 0 : index
    %c0_54 = arith.constant 0 : index
    %99 = vector.load %arg14[%c0_52, %c0_53, %c0_54] : memref<1x256x128xbf16, #tpu.memory_space<vmem>>, vector<1x256x128xbf16>
    %100 = vector.shape_cast %99 : vector<1x256x128xbf16> to vector<256x128xbf16>
    %cst_55 = arith.constant dense<0.000000e+00> : vector<8x128xf32>
    %101 = tpu.matmul %98, %100, %cst_55 {dimension_numbers = #tpu.dot_dimension_numbers<[1], [0], [0], [1], [0, 0, 1, 1], [], []>} : vector<8x256xbf16>, vector<256x128xbf16>, vector<8x128xf32> -> vector<8x128xf32>
    %c0_56 = arith.constant 0 : index
    %c0_57 = arith.constant 0 : index
    %c0_58 = arith.constant 0 : index
    %102 = vector.load %arg15[%c0_56, %c0_57, %c0_58] : memref<1x1x128xf32, #tpu.memory_space<vmem>>, vector<1x1x128xf32>
    %103 = vector.shape_cast %102 : vector<1x1x128xf32> to vector<1x128xf32>
    %104 = vector.broadcast %103 : vector<1x128xf32> to vector<8x128xf32>
    %105 = arith.addf %101, %104 : vector<8x128xf32>
    %106 = arith.addf %105, %76 : vector<8x128xf32>
    %c0_59 = arith.constant 0 : index
    %c0_60 = arith.constant 0 : index
    %c0_61 = arith.constant 0 : index
    %107 = vector.load %arg16[%c0_59, %c0_60, %c0_61] : memref<1x1x128xf32, #tpu.memory_space<vmem>>, vector<1x1x128xf32>
    %108 = vector.shape_cast %107 : vector<1x1x128xf32> to vector<1x128xf32>
    %c0_62 = arith.constant 0 : index
    %c0_63 = arith.constant 0 : index
    %c0_64 = arith.constant 0 : index
    %109 = vector.load %arg17[%c0_62, %c0_63, %c0_64] : memref<1x1x128xf32, #tpu.memory_space<vmem>>, vector<1x1x128xf32>
    %110 = vector.shape_cast %109 : vector<1x1x128xf32> to vector<1x128xf32>
    %cst_65 = arith.constant dense<0.000000e+00> : vector<8xf32>
    %111 = vector.multi_reduction <add>, %106, %cst_65 [1] : vector<8x128xf32> to vector<8xf32>
    %112 = vector.shape_cast %111 : vector<8xf32> to vector<8x1xf32>
    %cst_66 = arith.constant 1.280000e+02 : f32
    %113 = vector.broadcast %cst_66 : f32 to vector<8x1xf32>
    %114 = arith.divf %112, %113 : vector<8x1xf32>
    %115 = vector.broadcast %114 : vector<8x1xf32> to vector<8x128xf32>
    %116 = arith.subf %106, %115 : vector<8x128xf32>
    %117 = arith.mulf %116, %116 : vector<8x128xf32>
    %cst_67 = arith.constant dense<0.000000e+00> : vector<8xf32>
    %118 = vector.multi_reduction <add>, %117, %cst_67 [1] : vector<8x128xf32> to vector<8xf32>
    %119 = vector.shape_cast %118 : vector<8xf32> to vector<8x1xf32>
    %cst_68 = arith.constant 1.280000e+02 : f32
    %120 = vector.broadcast %cst_68 : f32 to vector<8x1xf32>
    %121 = arith.divf %119, %120 : vector<8x1xf32>
    %122 = vector.broadcast %114 : vector<8x1xf32> to vector<8x128xf32>
    %123 = arith.subf %106, %122 : vector<8x128xf32>
    %cst_69 = arith.constant 9.99999996E-13 : f32
    %124 = vector.broadcast %cst_69 : f32 to vector<8x1xf32>
    %125 = arith.addf %121, %124 : vector<8x1xf32>
    %126 = math.rsqrt %125 : vector<8x1xf32>
    %127 = vector.broadcast %126 : vector<8x1xf32> to vector<8x128xf32>
    %128 = arith.mulf %123, %127 : vector<8x128xf32>
    %129 = vector.broadcast %108 : vector<1x128xf32> to vector<8x128xf32>
    %130 = arith.mulf %128, %129 : vector<8x128xf32>
    %131 = vector.broadcast %110 : vector<1x128xf32> to vector<8x128xf32>
    %132 = arith.addf %130, %131 : vector<8x128xf32>
    %c0_70 = arith.constant 0 : index
    %c0_71 = arith.constant 0 : index
    %133 = vector.load %arg25[%c0_70, %c0_71] : memref<8x128xf32, #tpu.memory_space<vmem>>, vector<8x128xf32>
    tpu.vector_store %arg25[%c0_70, %c0_71], %132 {strides = array<i32>} : memref<8x128xf32, #tpu.memory_space<vmem>>, vector<8x128xf32>,
    %c1_i32 = arith.constant 1 : i32
    %134 = arith.cmpi eq, %arg1, %c1_i32 : i32
    %135 = arith.extui %134 : i1 to i32
    %c0_i32_72 = arith.constant 0 : i32
    %136 = arith.cmpi ne, %135, %c0_i32_72 : i32
    scf.if %136 {
      %c0_73 = arith.constant 0 : index
      %c0_74 = arith.constant 0 : index
      %c0_75 = arith.constant 0 : index
      %137 = vector.load %arg22[%c0_73, %c0_74, %c0_75] : memref<1x8x128xf32, #tpu.memory_space<vmem>>, vector<1x8x128xf32>
      %138 = vector.shape_cast %137 : vector<1x8x128xf32> to vector<8x128xf32>
      %139 = vector.shape_cast %132 : vector<8x128xf32> to vector<1x8x128xf32>
      tpu.vector_store %arg22[%c0_73, %c0_74, %c0_75], %139 {strides = array<i32>} : memref<1x8x128xf32, #tpu.memory_space<vmem>>, vector<1x8x128xf32>,
      %140 = vector.extract_strided_slice %132 {offsets = [0, 0], sizes = [1, 128], strides = [1, 1]} : vector<8x128xf32> to vector<1x128xf32>
      %141 = arith.truncf %140 : vector<1x128xf32> to vector<1x128xbf16>
      %c0_76 = arith.constant 0 : index
      %c0_77 = arith.constant 0 : index
      %142 = vector.load %arg18[%c0_76, %c0_77] : memref<128x128xbf16, #tpu.memory_space<vmem>>, vector<128x128xbf16>
      %cst_78 = arith.constant dense<0.000000e+00> : vector<1x128xf32>
      %143 = tpu.matmul %141, %142, %cst_78 {dimension_numbers = #tpu.dot_dimension_numbers<[1], [0], [0], [1], [0, 0, 1, 1], [], []>} : vector<1x128xbf16>, vector<128x128xbf16>, vector<1x128xf32> -> vector<1x128xf32>
      %c0_79 = arith.constant 0 : index
      %c0_80 = arith.constant 0 : index
      %144 = vector.load %arg19[%c0_79, %c0_80] : memref<1x128xf32, #tpu.memory_space<vmem>>, vector<1x128xf32>
      %145 = arith.addf %143, %144 : vector<1x128xf32>
      %146 = math.tanh %145 : vector<1x128xf32>
      %147 = arith.truncf %146 : vector<1x128xf32> to vector<1x128xbf16>
      %c0_81 = arith.constant 0 : index
      %c0_82 = arith.constant 0 : index
      %148 = vector.load %arg20[%c0_81, %c0_82] : memref<128x256xbf16, #tpu.memory_space<vmem>>, vector<128x256xbf16>
      %cst_83 = arith.constant dense<0.000000e+00> : vector<1x256xf32>
      %149 = tpu.matmul %147, %148, %cst_83 {dimension_numbers = #tpu.dot_dimension_numbers<[1], [0], [0], [1], [0, 0, 1, 1], [], []>} : vector<1x128xbf16>, vector<128x256xbf16>, vector<1x256xf32> -> vector<1x256xf32>
      %c0_84 = arith.constant 0 : index
      %c0_85 = arith.constant 0 : index
      %150 = vector.load %arg21[%c0_84, %c0_85] : memref<1x256xf32, #tpu.memory_space<vmem>>, vector<1x256xf32>
      %151 = arith.addf %149, %150 : vector<1x256xf32>
      %c0_86 = arith.constant 0 : index
      %c0_87 = arith.constant 0 : index
      %c0_88 = arith.constant 0 : index
      %152 = vector.load %arg24[%c0_86, %c0_87, %c0_88] : memref<1x1x256xf32, #tpu.memory_space<vmem>>, vector<1x1x256xf32>
      %153 = vector.shape_cast %152 : vector<1x1x256xf32> to vector<1x256xf32>
      %154 = vector.shape_cast %151 : vector<1x256xf32> to vector<1x1x256xf32>
      tpu.vector_store %arg24[%c0_86, %c0_87, %c0_88], %154 {strides = array<i32>} : memref<1x1x256xf32, #tpu.memory_space<vmem>>, vector<1x1x256xf32>,
    } else {
    }
    return
  }
  func.func @transform_0(%arg0: i32, %arg1: i32) -> (i32, i32, i32) {
    %c0_i32 = arith.constant 0 : i32
    %c0_i32_0 = arith.constant 0 : i32
    %c0_i32_1 = arith.constant 0 : i32
    return %arg0, %c0_i32, %c0_i32_0 : i32, i32, i32
  }
  func.func @transform_1(%arg0: i32, %arg1: i32) -> (i32, i32, i32) {
    %c0_i32 = arith.constant 0 : i32
    %c0_i32_0 = arith.constant 0 : i32
    %c0_i32_1 = arith.constant 0 : i32
    return %arg0, %c0_i32, %c0_i32_0 : i32, i32, i32
  }
  func.func @transform_2(%arg0: i32, %arg1: i32) -> (i32, i32) {
    %c0_i32 = arith.constant 0 : i32
    %c0_i32_0 = arith.constant 0 : i32
    %c0_i32_1 = arith.constant 0 : i32
    return %c0_i32, %c0_i32_0 : i32, i32
  }
  func.func @transform_3(%arg0: i32, %arg1: i32) -> (i32, i32) {
    %c0_i32 = arith.constant 0 : i32
    %c0_i32_0 = arith.constant 0 : i32
    %c0_i32_1 = arith.constant 0 : i32
    return %c0_i32, %c0_i32_0 : i32, i32
  }
  func.func @transform_4(%arg0: i32, %arg1: i32) -> (i32, i32, i32, i32) {
    %c0_i32 = arith.constant 0 : i32
    %c0_i32_0 = arith.constant 0 : i32
    %c0_i32_1 = arith.constant 0 : i32
    %c0_i32_2 = arith.constant 0 : i32
    return %arg1, %c0_i32, %c0_i32_0, %c0_i32_1 : i32, i32, i32, i32
  }
  func.func @transform_5(%arg0: i32, %arg1: i32) -> (i32, i32, i32, i32) {
    %c0_i32 = arith.constant 0 : i32
    %c0_i32_0 = arith.constant 0 : i32
    %c0_i32_1 = arith.constant 0 : i32
    %c0_i32_2 = arith.constant 0 : i32
    return %arg1, %c0_i32, %c0_i32_0, %c0_i32_1 : i32, i32, i32, i32
  }
  func.func @transform_6(%arg0: i32, %arg1: i32) -> (i32, i32, i32, i32) {
    %c0_i32 = arith.constant 0 : i32
    %c0_i32_0 = arith.constant 0 : i32
    %c0_i32_1 = arith.constant 0 : i32
    %c0_i32_2 = arith.constant 0 : i32
    return %arg1, %c0_i32, %c0_i32_0, %c0_i32_1 : i32, i32, i32, i32
  }
  func.func @transform_7(%arg0: i32, %arg1: i32) -> (i32, i32, i32) {
    %c0_i32 = arith.constant 0 : i32
    %c0_i32_0 = arith.constant 0 : i32
    %c0_i32_1 = arith.constant 0 : i32
    return %arg1, %c0_i32, %c0_i32_0 : i32, i32, i32
  }
  func.func @transform_8(%arg0: i32, %arg1: i32) -> (i32, i32, i32) {
    %c0_i32 = arith.constant 0 : i32
    %c0_i32_0 = arith.constant 0 : i32
    %c0_i32_1 = arith.constant 0 : i32
    return %arg1, %c0_i32, %c0_i32_0 : i32, i32, i32
  }
  func.func @transform_9(%arg0: i32, %arg1: i32) -> (i32, i32, i32) {
    %c0_i32 = arith.constant 0 : i32
    %c0_i32_0 = arith.constant 0 : i32
    %c0_i32_1 = arith.constant 0 : i32
    return %arg1, %c0_i32, %c0_i32_0 : i32, i32, i32
  }
  func.func @transform_10(%arg0: i32, %arg1: i32) -> (i32, i32, i32) {
    %c0_i32 = arith.constant 0 : i32
    %c0_i32_0 = arith.constant 0 : i32
    %c0_i32_1 = arith.constant 0 : i32
    return %arg1, %c0_i32, %c0_i32_0 : i32, i32, i32
  }
  func.func @transform_11(%arg0: i32, %arg1: i32) -> (i32, i32, i32) {
    %c0_i32 = arith.constant 0 : i32
    %c0_i32_0 = arith.constant 0 : i32
    %c0_i32_1 = arith.constant 0 : i32
    return %arg1, %c0_i32, %c0_i32_0 : i32, i32, i32
  }
  func.func @transform_12(%arg0: i32, %arg1: i32) -> (i32, i32, i32) {
    %c0_i32 = arith.constant 0 : i32
    %c0_i32_0 = arith.constant 0 : i32
    %c0_i32_1 = arith.constant 0 : i32
    return %arg1, %c0_i32, %c0_i32_0 : i32, i32, i32
  }
  func.func @transform_13(%arg0: i32, %arg1: i32) -> (i32, i32, i32) {
    %c0_i32 = arith.constant 0 : i32
    %c0_i32_0 = arith.constant 0 : i32
    %c0_i32_1 = arith.constant 0 : i32
    return %arg1, %c0_i32, %c0_i32_0 : i32, i32, i32
  }
  func.func @transform_14(%arg0: i32, %arg1: i32) -> (i32, i32, i32) {
    %c0_i32 = arith.constant 0 : i32
    %c0_i32_0 = arith.constant 0 : i32
    %c0_i32_1 = arith.constant 0 : i32
    return %arg1, %c0_i32, %c0_i32_0 : i32, i32, i32
  }
  func.func @transform_15(%arg0: i32, %arg1: i32) -> (i32, i32, i32) {
    %c0_i32 = arith.constant 0 : i32
    %c0_i32_0 = arith.constant 0 : i32
    %c0_i32_1 = arith.constant 0 : i32
    return %arg1, %c0_i32, %c0_i32_0 : i32, i32, i32
  }
  func.func @transform_16(%arg0: i32, %arg1: i32) -> (i32, i32) {
    %c0_i32 = arith.constant 0 : i32
    %c0_i32_0 = arith.constant 0 : i32
    %c0_i32_1 = arith.constant 0 : i32
    return %c0_i32, %c0_i32_0 : i32, i32
  }
  func.func @transform_17(%arg0: i32, %arg1: i32) -> (i32, i32) {
    %c0_i32 = arith.constant 0 : i32
    %c0_i32_0 = arith.constant 0 : i32
    %c0_i32_1 = arith.constant 0 : i32
    return %c0_i32, %c0_i32_0 : i32, i32
  }
  func.func @transform_18(%arg0: i32, %arg1: i32) -> (i32, i32) {
    %c0_i32 = arith.constant 0 : i32
    %c0_i32_0 = arith.constant 0 : i32
    %c0_i32_1 = arith.constant 0 : i32
    return %c0_i32, %c0_i32_0 : i32, i32
  }
  func.func @transform_19(%arg0: i32, %arg1: i32) -> (i32, i32) {
    %c0_i32 = arith.constant 0 : i32
    %c0_i32_0 = arith.constant 0 : i32
    %c0_i32_1 = arith.constant 0 : i32
    return %c0_i32, %c0_i32_0 : i32, i32
  }
  func.func @transform_20(%arg0: i32, %arg1: i32) -> (i32, i32, i32) {
    %c0_i32 = arith.constant 0 : i32
    %c0_i32_0 = arith.constant 0 : i32
    %c0_i32_1 = arith.constant 0 : i32
    return %arg0, %c0_i32, %c0_i32_0 : i32, i32, i32
  }
  func.func @transform_21(%arg0: i32, %arg1: i32) -> (i32, i32, i32, i32) {
    %c0_i32 = arith.constant 0 : i32
    %c0_i32_0 = arith.constant 0 : i32
    %c0_i32_1 = arith.constant 0 : i32
    return %arg0, %arg1, %c0_i32, %c0_i32_0 : i32, i32, i32, i32
  }
  func.func @transform_22(%arg0: i32, %arg1: i32) -> (i32, i32, i32) {
    %c0_i32 = arith.constant 0 : i32
    %c0_i32_0 = arith.constant 0 : i32
    %c0_i32_1 = arith.constant 0 : i32
    return %arg0, %c0_i32, %c0_i32_0 : i32, i32, i32
  }
}

</mosaic_0001>

<bundles_post_ra>
// kernel: fwd.1
= control target key start
LH: loop header
LB: loop body
LE: loop exit
PB: predicated region body
PF: predicated region fallthrough
CT: control target
= control target key end

     0   :  { %s5083_s0 = inlined_call_operand.vmem [shape: f32[2,8,128], index: 0, kind: input, shape index: {}]   ;;  %s5084_s1 = inlined_call_operand.vmem [shape: f32[2,1,8], index: 1, kind: input, shape index: {}]   ;;  %s5085_s2 = inlined_call_operand.vmem [shape: f32[1,128], index: 2, kind: input, shape index: {}]   ;;  %s5086_s3 = inlined_call_operand.vmem [shape: f32[1,128], index: 3, kind: input, shape index: {}]   ;;  %s5087_s4 = inlined_call_operand.vmem [shape: bf16[2,12,128,32], index: 4, kind: input, shape index: {}]   ;;  %s5088_s5 = inlined_call_operand.vmem [shape: f32[2,12,1,32], index: 5, kind: input, shape index: {}]   ;;  %s5089_s6 = inlined_call_operand.vmem [shape: bf16[2,4,32,128], index: 6, kind: input, shape index: {}]   ;;  %s5090_s7 = inlined_call_operand.vmem [shape: f32[2,1,128], index: 7, kind: input, shape index: {}]   ;;  %s5091_s8 = inlined_call_operand.vmem [shape: f32[2,1,128], index: 8, kind: input, shape index: {}]   ;;  %s5092_s9 = inlined_call_operand.vmem [shape: f32[2,1,128], index: 9, kind: input, shape index: {}]   ;;  %s5093_s10 = inlined_call_operand.vmem [shape: bf16[2,128,256], index: 10, kind: input, shape index: {}]   ;;  %s5094_s11 = inlined_call_operand.vmem [shape: f32[2,1,256], index: 11, kind: input, shape index: {}]   ;;  %s5095_s12 = inlined_call_operand.vmem [shape: bf16[2,256,128], index: 12, kind: input, shape index: {}]   ;;  %s5096_s13 = inlined_call_operand.vmem [shape: f32[2,1,128], index: 13, kind: input, shape index: {}]   ;;  %s5097_s14 = inlined_call_operand.vmem [shape: f32[2,1,128], index: 14, kind: input, shape index: {}]   ;;  %s5098_s15 = inlined_call_operand.vmem [shape: f32[2,1,128], index: 15, kind: input, shape index: {}]   ;;  %s5099_s16 = inlined_call_operand.vmem [shape: bf16[128,128], index: 16, kind: input, shape index: {}]   ;;  %s5100_s17 = inlined_call_operand.vmem [shape: f32[1,128], index: 17, kind: input, shape index: {}]   ;;  %s5101_s18 = inlined_call_operand.vmem [shape: bf16[128,256], index: 18, kind: input, shape index: {}]   ;;  %s5102_s19 = inlined_call_operand.vmem [shape: f32[1,256], index: 19, kind: input, shape index: {}]   ;;  %s5103_s20 = inlined_call_operand.hbm [shape: f32[2,8,128], index: 20, kind: output, shape index: {0}]   ;;  %s5104_s21 = inlined_call_operand.vmem [shape: f32[2,8,8,8], index: 21, kind: output, shape index: {1}]   ;;  %s5105_s22 = inlined_call_operand.vmem [shape: f32[2,1,256], index: 22, kind: output, shape index: {2}]  }
   0x1   :  { %5124 = sst [smem:[#allocation20_spill]] %s5083_s0 }
   0x2   :  { %5125 = sst [smem:[#allocation21_spill]] %s5084_s1 }
   0x3   :  { %5126 = sst [smem:[#allocation22_spill]] %s5085_s2 }
   0x4   :  { %5127 = sst [smem:[#allocation23_spill]] %s5086_s3 }
   0x5   :  { %5128 = sst [smem:[#allocation24_spill]] %s5087_s4 }
   0x6   :  { %5129 = sst [smem:[#allocation25_spill]] %s5088_s5 }
   0x7   :  { %5130 = sst [smem:[#allocation26_spill]] %s5089_s6 }
   0x8   :  { %5131 = sst [smem:[#allocation27_spill]] %s5090_s7 }
   0x9   :  { %5132 = sst [smem:[#allocation28_spill]] %s5091_s8 }
   0xa   :  { %5133 = sst [smem:[#allocation29_spill]] %s5092_s9 }
   0xb   :  { %5134 = sst [smem:[#allocation30_spill]] %s5093_s10 }
   0xc   :  { %5135 = sst [smem:[#allocation31_spill]] %s5094_s11 }
   0xd   :  { %5136 = sst [smem:[#allocation32_spill]] %s5095_s12 }
   0xe   :  { %5137 = sst [smem:[#allocation33_spill]] %s5096_s13 }
   0xf   :  { %5138 = sst [smem:[#allocation34_spill]] %s5097_s14 }
  0x10   :  { %5139 = sst [smem:[#allocation35_spill]] %s5098_s15 }
  0x11   :  { %5140 = sst [smem:[#allocation36_spill]] %s5099_s16 }
  0x12   :  { %5141 = sst [smem:[#allocation37_spill]] %s5100_s17 }
  0x13   :  { %5142 = sst [smem:[#allocation38_spill]] %s5101_s18 }
  0x14   :  { %5143 = sst [smem:[#allocation39_spill]] %s5102_s19 }
  0x15   :  { %5144 = sst [smem:[#allocation40_spill]] %s5103_s20 }
  0x16   :  { %5145 = sst [smem:[#allocation41_spill]] %s5104_s21 }
  0x17   :  { %5146 = sst [smem:[#allocation42_spill]] %s5105_s22 }
  0x18   :  { %28 = vsyncpa [#allocation4], 0 }
  0x19   :  { %30 = vsyncpa [#allocation4 + $0x1], 0  ;;  %s4455_s3 = smov 0   ;;  %s4457_s28 = smov 0  }
  0x1a   :  { %s4459_s29 = smov 0   ;;  %s4461_s30 = smov 0  }
  0x1b   :  { %s4463_s4 = smov 0   ;;  %s4465_s0 = smov 0  }
  0x1c   :  { %s4467_s23 = smov 0   ;;  %s4469_s1 = smov 0  }
  0x1d LB: > { %5147 = sst [smem:[#allocation6_spill]] %s4308_s3  ;;  %s3274_s5 = sadd.s32 4294967295, %s4336_s1   ;;  %s4336_s1 = sphi %s4469_s1, %s36_s1   ;;  %s4332_s23 = sphi %s4467_s23, %s5213_s23   ;;  %s4328_s0 = sphi %s4465_s0, %s5212_s0   ;;  %s4324_s4 = sphi %s4463_s4, %s5211_s4   ;;  %s4320_s30 = sphi %s4461_s30, %s5210_s30   ;;  %s4316_s29 = sphi %s4459_s29, %s5209_s29   ;;  %s4312_s28 = sphi %s4457_s28, %s5208_s28   ;;  %s4308_s3 = sphi %s4455_s3, %s5207_s3  }
  0x1e   : > { %5148 = sst [smem:[#allocation7_spill]] %s4312_s28  ;;  %s3275_s24 = sadd.s32 4294967294, %s4336_s1  }
  0x1f   : > { %5149 = sst [smem:[#allocation8_spill]] %s4316_s29  ;;  %s45_s6 = sadd.s32 1, %s4328_s0 }
  0x20   : > { %5150 = sst [smem:[#allocation9_spill]] %s4320_s30  ;;  %p46_p0 = scmp.ge.s32.totalorder %s45_s6, 2 }
  0x21   : > { %5151 = sst [smem:[#allocation10_spill]] %s4324_s4  ;;  %s48_s25 = sadd.s32 1, %s4332_s23 }
  0x22   : > { %5152 = sst [smem:[#allocation11_spill]] %s4328_s0  ;;  %p555_p1 = scmp.ne.s32.totalorder %s4316_s29, %s4312_s28 }
  0x23   : > { %5153 = sst [smem:[#allocation12_spill]] %s4332_s23  ;;  %p556_p2 = scmp.eq.s32.totalorder %s3274_s5, 3 }
  0x24   : > { %5154 = sst [smem:[#allocation13_spill]] %s4336_s1  ;;  %s5215_s6 = smov (%p46_p0, %s45_s6), 0 }
  0x25   : > { %5155 = sst [smem:[#allocation14_spill]] %s5215_s6  ;;  %s5217_s25 = smov (!%p46_p0, %s48_s25), %s4332_s23 }
  0x26   : > { %p4504_p3 = por %p556_p2, %p555_p1  ;;  %p561_p4 = scmp.ne.s32.totalorder %s4312_s28, %s4308_s3 }
  0x27   : > { %p50_p5 = scmp.ge.s32.totalorder %s5217_s25, 2  ;;  %p562_p6 = scmp.eq.s32.totalorder %s3275_s24, 3 }
  0x28   : > { %s5156_s26 = scalar_select %p4504_p3, 1, 0 }
  0x29   : > { %p3278_p7 = scmp.ge.s32.totalorder %s4336_s1, 1  ;;  %p747_p8 = scmp.lt.s32.totalorder %s4336_s1, 5 }
  0x2a   : > { %5157 = sst [smem:[#allocation15_spill]] %s5156_s26  ;;  %s5219_s25 = smov (%p50_p5, %s5217_s25), 0 }
  0x2b   : > { %5158 = sst [smem:[#allocation16_spill]] %s5219_s25  ;;  %p4514_p9 = por %p562_p6, %p561_p4 }
  0x2c   : > { %p748_p10 = pnand %p3278_p7, %p747_p8  ;;  %s542_s27 = ssub.s32 %s4332_s23, %s5219_s25 }
  0x2d   : > { %s5159_s2 = scalar_select %p4514_p9, 1, 0 }
  0x2e   : > { %s545_s5 = sadd.s32 1, %s4316_s29  ;;  %p543_p11 = scmp.eq.s32.totalorder %s542_s27, 0 }
  0x2f   : > { %5160 = sst [smem:[#allocation17_spill]] %s5159_s2  ;;  %751 = sbr.rel (%p748_p10) target bundleno = 2402 (0x962), region = 100 }
  0x30   : > { %s4522_s6 = scalar_select %p543_p11, %s4316_s29, %s545_s5  }
  0x32   : > { %5161 = sst [smem:[#allocation18_spill]] %s4522_s6 }
  0x34   : > { %s5110_s24 = sand.u32 1, %s4312_s28   ;;  %p870_p12 = scmp.lt.s32.totalorder %s4324_s4, 1 }
  0x35   : > { %s4528_s0 = sshll.u32 %s5110_s24, 3  ;;  %p877_p13 = scmp.lt.s32.totalorder %s4320_s30, 1 }
  0x36   : > { %s3289_s2 = sshll.u32 %s4320_s30, 2  ;;  %s5163_s20 = sld [smem:[#allocation20_spill]] }
  0x37   : > { %s4533_s25 = scalar_select %p870_p12, %s4324_s4, 1 }
  0x38   : > { %s4536_s27 = scalar_select %p877_p13, %s4320_s30, 1 }
  0x39   : > { %s3280_s5 = sshll.u32 %s4533_s25, 3  ;;  %s5164_s16 = sld [smem:[#allocation24_spill]] }
  0x3a   : > { %s4114_s28 = smul.u32 768, %s4536_s27  ;;  %s3951_s19 = sshll.u32 %s4536_s27, 6 }
  0x3b   : > { %s4115_s4 = smul.u32 12, %s4536_s27  ;;  %s5165_s23 = sld [smem:[#allocation26_spill]] }
  0x3c   : > { %s873_s26 = scalar_lea.vmem %s5163_s20, %s3280_s5  ;;  %s5166_s1 = sld [smem:[#allocation25_spill]] }
  0x3d   : > { %s3286_s21 = sshll.u32 %s4536_s27, 1  ;;  %s5170_s10 = sld [smem:[#allocation30_spill]] }
  0x3e   : > { %s5172_s11 = sld [smem:[#allocation31_spill]]  ;;  %p926_p0 = scmp.lt.s32.totalorder %s3289_s2, 7 }
  0x3f   : > { %s4552_s30 = scalar_lea.vmem %s5164_s16, %s4114_s28  ;;  %s5173_s13 = sld [smem:[#allocation32_spill]] }
  0x40   : > { %s5174_s28 = sld [smem:[#allocation33_spill]]  ;;  %s5221_s2 = smov (!%p926_p0, %s3289_s2), 7 }
  0x41   : > { %s4557_s6 = scalar_lea.vmem %s5165_s23, %s3951_s19  ;;  %s3952_s19 = sshll.u32 %s4536_s27, 7 }
  0x42   : > { %s4562_s20 = scalar_lea.vmem %s5166_s1, %s4115_s4  ;;  %s5175_s8 = sld [smem:[#allocation34_spill]] }
  0x43   : > { %s4581_s4 = scalar_lea.vmem %s5170_s10, %s3952_s19  ;;  %s5176_s7 = sld [smem:[#allocation35_spill]] }
  0x44   : > { %5171 = sst [smem:[#allocation19_spill]] %s4581_s4  ;;  %s4586_s15 = scalar_lea.vmem %s5172_s11, %s3286_s21 }
  0x45   : > { %s4591_s1 = scalar_lea.vmem %s5173_s13, %s3952_s19  ;;  %s3292_s21 = sshll.u32 %s4533_s25, 1 }
  0x46   : > { %s916_s17 = scalar_lea.vmem %s5174_s28, %s4536_s27  ;;  %s5177_s11 = sld [smem:[#allocation42_spill]] }
  0x47   : > { %s929_s19 = sadd.s32 %s3280_s5, %s5221_s2  ;;  %s5178_s16 = sld [smem:[#allocation41_spill]] }
  0x48   : > { %s919_s22 = scalar_lea.vmem %s5175_s8, %s4536_s27  ;;  %s3291_s12 = sshll.u32 %s929_s19, 3 }
  0x49   : > { %s922_s4 = scalar_lea.vmem %s5176_s7, %s4536_s27  ;;  %s852_s8 = scalar_lea.vmem [#allocation3], %s4528_s0 }
  0x4a   : > { %s5179_s9 = sld [smem:[#allocation9_spill]] }
  0x4c   : > { %s4609_s29 = scalar_lea.vmem %s5177_s11, %s3292_s21 }
  0x4d   : > { %s4614_s18 = scalar_lea.vmem %s5178_s16, %s3291_s12 }
  0x50   : > { %p3293_p1 = scmp.ne.s32.totalorder %s5179_s9, 0 }
  0x51   : > { %s5180_s11 = sld [smem:[#allocation22_spill]] (!%p3293_p1) }
  0x52   : > { %941 = sbr.rel (%p3293_p1) target bundleno = 355 (0x163), region = 104  ;;  %s5181_s2 = sld [smem:[#allocation23_spill]] (!%p3293_p1) }
  0x57   : > { %v942_v0 = vld [vmem:[%s873_s26] sm:$0xff]  ;;  %v4338_v1 = vmov 128.0  }
  0x58   : > { %945 = vadd.xlane.f32.xlu0 %v942_v0  ;;  %4191 = vrcp.f32 %v4338_v1  ;;  %v4189_v21 = vld [vmem:[%s5180_s11] ss:$0 sm:$0xff] }
  0x59   : > { %v4190_v23 = vld [vmem:[%s5181_s2] ss:$0 sm:$0xff] }
  0x5e   : > { %v4192_v2 = vpop.eup %4191 }
  0x5f   : > { %v948_v3 = vmul.f32 128.0, %v4192_v2  ;;  %vm952_vm0 = vweird.f32 %v4192_v2 }
  0x61   : > { %v949_v4 = vsub.f32 1.0, %v948_v3 }
  0x63   : > { %v950_v5 = vmul.f32 %v4192_v2, %v949_v4 }
  0x65   : > { %v951_v6 = vadd.f32 %v4192_v2, %v950_v5 }
  0x67   : > { %v953_v7 = vsel %vm952_vm0, %v4192_v2, %v951_v6 }
  0xcb   : > { %v946_v8 = vpop.xlane.xlu0 %945 }
  0xcc   : > { %v954_v9 = vmul.f32 %v953_v7, %v946_v8 }
  0xce   : > { %v955_v10 = vsub.f32 %v942_v0, %v954_v9 }
  0xd0   : > { %v956_v11 = vmul.f32 %v955_v10, %v955_v10 }
  0xd2   : > { %957 = vadd.xlane.f32.xlu0 %v956_v11 }
 0x145   : > { %v958_v12 = vpop.xlane.xlu0 %957 }
 0x146   : > { %v959_v13 = vmul.f32 %v958_v12, %v953_v7 }
 0x148   : > { %v960_v14 = vadd.f32 1e-12, %v959_v13 }
 0x14a   : > { %4193 = vrsqrt.f32 %v960_v14  ;;  %vm967_vm2 = vweird.f32 %v960_v14 }
 0x150   : > { %v4194_v15 = vpop.eup %4193 }
 0x151   : > { %v962_v16 = vmul.f32 %v4194_v15, %v960_v14  ;;  %vm968_vm1 = vweird.f32 %v4194_v15 }
 0x152   : > { %vm969_vm3 = vmor %vm967_vm2, %vm968_vm1 }
 0x153   : > { %v963_v17 = vmul.f32 %v4194_v15, %v962_v16 }
 0x155   : > { %v964_v18 = vmul.f32 0.5, %v963_v17 }
 0x157   : > { %v965_v19 = vsub.f32 1.5, %v964_v18 }
 0x159   : > { %v966_v20 = vmul.f32 %v4194_v15, %v965_v19 }
 0x15b   : > { %v970_v22 = vsel %vm969_vm3, %v4194_v15, %v966_v20 }
 0x15c   : > { %v971_v24 = vmul.f32 %v970_v22, %v955_v10 }
 0x15e   : > { %v975_v25 = vmul.f32 %v4189_v21, %v971_v24 }
 0x160   : > { %v979_v26 = vadd.f32 %v4190_v23, %v975_v25 }
 0x162   : > { %980 = vst [vmem:[#allocation2] sm:$0xff] %v979_v26 }
 0x163 PF: > { %v3961_v27 = vld [vmem:[%s4552_s30 + $0x38] sm:$0xff]  ;;  %v3960_v31 = vld [vmem:[%s4552_s30 + $0x30] sm:$0xff]  ;;  %v3959_v35 = vld [vmem:[%s4552_s30 + $0x28] sm:$0xff]  ;;  %vm1971_vm4 = vcmask 261120   ;;  %vm2156_vm5 = vcmask 1043456   ;;  %s5182_s23 = sld [smem:[#allocation21_spill]] }
 0x164   : > { %v3969_v28 = vld [vmem:[%s4552_s30 + $0x78] sm:$0xff]  ;;  %1271 = vmatpush.bf16.msra.mxu0 %v3961_v27  ;;  %v3968_v32 = vld [vmem:[%s4552_s30 + $0x70] sm:$0xff]  ;;  %v3967_v36 = vld [vmem:[%s4552_s30 + $0x68] sm:$0xff]  ;;  %vm2048_vm6 = vcmask 64512   ;;  %s5185_s24 = sld [smem:[#allocation27_spill]] }
 0x165   : > { %v3977_v29 = vld [vmem:[%s4552_s30 + $0xb8] sm:$0xff]  ;;  %1332 = vmatpush.bf16.msra.mxu1 %v3969_v28  ;;  %v3976_v33 = vld [vmem:[%s4552_s30 + $0xb0] sm:$0xff]  ;;  %v3975_v37 = vld [vmem:[%s4552_s30 + $0xa8] sm:$0xff]  ;;  %s5187_s13 = sld [smem:[#allocation28_spill]] }
 0x166   : > { %v3985_v30 = vld [vmem:[%s4552_s30 + $0xf8] sm:$0xff]  ;;  %1393 = vmatpush.bf16.msra.mxu2 %v3977_v29  ;;  %v3984_v34 = vld [vmem:[%s4552_s30 + $0xf0] sm:$0xff]  ;;  %v3983_v38 = vld [vmem:[%s4552_s30 + $0xe8] sm:$0xff]  ;;  %s5189_s9 = sld [smem:[#allocation29_spill]] }
 0x167   : > { %1454 = vmatpush.bf16.msra.mxu3 %v3985_v30  ;;  %v3958_v39 = vld [vmem:[%s4552_s30 + $0x20] sm:$0xff]  ;;  %v3957_v43 = vld [vmem:[%s4552_s30 + $0x18] sm:$0xff]  ;;  %v3956_v47 = vld [vmem:[%s4552_s30 + $0x10] sm:$0xff]  ;;  %s5194_s5 = sld [smem:[#allocation9_spill]] }
 0x168   : > { %1272 = vmatpush.bf16.msra.mxu0 %v3960_v31  ;;  %v3966_v40 = vld [vmem:[%s4552_s30 + $0x60] sm:$0xff]  ;;  %v3965_v44 = vld [vmem:[%s4552_s30 + $0x58] sm:$0xff]  ;;  %v3964_v48 = vld [vmem:[%s4552_s30 + $0x50] sm:$0xff] }
 0x169   : > { %1333 = vmatpush.bf16.msra.mxu1 %v3968_v32  ;;  %v3974_v41 = vld [vmem:[%s4552_s30 + $0xa0] sm:$0xff]  ;;  %v3973_v45 = vld [vmem:[%s4552_s30 + $0x98] sm:$0xff]  ;;  %v3972_v49 = vld [vmem:[%s4552_s30 + $0x90] sm:$0xff]  ;;  %s5183_s21 = scalar_lea.vmem %s5182_s23, %s4533_s25  ;;  %s5184_s25 = sld [smem:[#allocation19_spill]] }
 0x16a   : > { %1394 = vmatpush.bf16.msra.mxu2 %v3976_v33  ;;  %v3982_v42 = vld [vmem:[%s4552_s30 + $0xe0] sm:$0xff]  ;;  %v3981_v46 = vld [vmem:[%s4552_s30 + $0xd8] sm:$0xff]  ;;  %v3980_v50 = vld [vmem:[%s4552_s30 + $0xd0] sm:$0xff]  ;;  %s5186_s3 = scalar_lea.vmem %s5185_s24, %s4536_s27 }
 0x16b   : > { %1455 = vmatpush.bf16.msra.mxu3 %v3984_v34  ;;  %v3955_v51 = vld [vmem:[%s4552_s30 + $0x8] sm:$0xff]  ;;  %v3954_v55 = vld [vmem:[%s4552_s30] sm:$0xff]  ;;  %v3993_v60 = vld [vmem:[%s4552_s30 + $0x138] sm:$0xff]  ;;  %s5188_s28 = scalar_lea.vmem %s5187_s13, %s4536_s27 }
 0x16c   : > { %1273 = vmatpush.bf16.msra.mxu0 %v3959_v35  ;;  %v3963_v52 = vld [vmem:[%s4552_s30 + $0x48] sm:$0xff]  ;;  %v3962_v56 = vld [vmem:[%s4552_s30 + $0x40] sm:$0xff]  ;;  %v4001_v61 = vld [vmem:[%s4552_s30 + $0x178] sm:$0xff]  ;;  %s5190_s7 = scalar_lea.vmem %s5189_s9, %s4536_s27 }
 0x16d   : > { %1334 = vmatpush.bf16.msra.mxu1 %v3967_v36  ;;  %v3971_v53 = vld [vmem:[%s4552_s30 + $0x88] sm:$0xff]  ;;  %v3970_v57 = vld [vmem:[%s4552_s30 + $0x80] sm:$0xff]  ;;  %v4009_v62 = vld [vmem:[%s4552_s30 + $0x1b8] sm:$0xff]  ;;  %p3850_p2 = scmp.ne.s32.totalorder %s5194_s5, 1 }
 0x16e   : > { %1395 = vmatpush.bf16.msra.mxu2 %v3975_v37  ;;  %v3979_v54 = vld [vmem:[%s4552_s30 + $0xc8] sm:$0xff]  ;;  %v3978_v58 = vld [vmem:[%s4552_s30 + $0xc0] sm:$0xff]  ;;  %v4017_v63 = vld [vmem:[%s4552_s30 + $0x1f8] sm:$0xff]  ;;  %s5197_s27 = sld [smem:[#allocation37_spill]] (!%p3850_p2) }
 0x16f   : > { %1456 = vmatpush.bf16.msra.mxu3 %v3983_v38  ;;  %v4656_v59 = vld [vmem:[#allocation2] sm:$0xff]  ;;  %v3992_v1 = vld [vmem:[%s4552_s30 + $0x130] sm:$0xff]  ;;  %v3991_v5 = vld [vmem:[%s4552_s30 + $0x128] sm:$0xff] }
 0x170   : > { %1274 = vmatpush.bf16.msra.mxu0 %v3958_v39  ;;  %v4664_v0 = vpack.c.bf16 %v4656_v59, %v4656_v59  ;;  %v4000_v2 = vld [vmem:[%s4552_s30 + $0x170] sm:$0xff]  ;;  %v3999_v6 = vld [vmem:[%s4552_s30 + $0x168] sm:$0xff]  ;;  %v3990_v9 = vld [vmem:[%s4552_s30 + $0x120] sm:$0xff] }
 0x171   : > { %1335 = vmatpush.bf16.msra.mxu1 %v3966_v40  ;;  %v4008_v3 = vld [vmem:[%s4552_s30 + $0x1b0] sm:$0xff]  ;;  %v4007_v7 = vld [vmem:[%s4552_s30 + $0x1a8] sm:$0xff]  ;;  %v3998_v10 = vld [vmem:[%s4552_s30 + $0x160] sm:$0xff] }
 0x172   : > { %1396 = vmatpush.bf16.msra.mxu2 %v3974_v41  ;;  %v4016_v4 = vld [vmem:[%s4552_s30 + $0x1f0] sm:$0xff]  ;;  %v4015_v8 = vld [vmem:[%s4552_s30 + $0x1e8] sm:$0xff]  ;;  %v4006_v11 = vld [vmem:[%s4552_s30 + $0x1a0] sm:$0xff] }
 0x173   : > { %1457 = vmatpush.bf16.msra.mxu3 %v3982_v42  ;;  %v4014_v12 = vld [vmem:[%s4552_s30 + $0x1e0] sm:$0xff]  ;;  %v3989_v13 = vld [vmem:[%s4552_s30 + $0x118] sm:$0xff]  ;;  %v3988_v17 = vld [vmem:[%s4552_s30 + $0x110] sm:$0xff] }
 0x174   : > { %1275 = vmatpush.bf16.msra.mxu0 %v3957_v43  ;;  %v3997_v14 = vld [vmem:[%s4552_s30 + $0x158] sm:$0xff]  ;;  %v3996_v18 = vld [vmem:[%s4552_s30 + $0x150] sm:$0xff]  ;;  %v3987_v21 = vld [vmem:[%s4552_s30 + $0x108] sm:$0xff] }
 0x175   : > { %1336 = vmatpush.bf16.msra.mxu1 %v3965_v44  ;;  %v4005_v15 = vld [vmem:[%s4552_s30 + $0x198] sm:$0xff]  ;;  %v4004_v19 = vld [vmem:[%s4552_s30 + $0x190] sm:$0xff]  ;;  %v3995_v22 = vld [vmem:[%s4552_s30 + $0x148] sm:$0xff] }
 0x176   : > { %1397 = vmatpush.bf16.msra.mxu2 %v3973_v45  ;;  %v4013_v16 = vld [vmem:[%s4552_s30 + $0x1d8] sm:$0xff]  ;;  %v4012_v20 = vld [vmem:[%s4552_s30 + $0x1d0] sm:$0xff]  ;;  %v4003_v23 = vld [vmem:[%s4552_s30 + $0x188] sm:$0xff] }
 0x177   : > { %1458 = vmatpush.bf16.msra.mxu3 %v3981_v46  ;;  %v4011_v24 = vld [vmem:[%s4552_s30 + $0x1c8] sm:$0xff]  ;;  %v3986_v25 = vld [vmem:[%s4552_s30 + $0x100] sm:$0xff]  ;;  %v4025_v29 = vld [vmem:[%s4552_s30 + $0x238] sm:$0xff] }
 0x178   : > { %1276 = vmatpush.bf16.msra.mxu0 %v3956_v47  ;;  %v3994_v26 = vld [vmem:[%s4552_s30 + $0x140] sm:$0xff]  ;;  %v4033_v30 = vld [vmem:[%s4552_s30 + $0x278] sm:$0xff]  ;;  %v4024_v33 = vld [vmem:[%s4552_s30 + $0x230] sm:$0xff] }
 0x179   : > { %1337 = vmatpush.bf16.msra.mxu1 %v3964_v48  ;;  %v4002_v27 = vld [vmem:[%s4552_s30 + $0x180] sm:$0xff]  ;;  %v4041_v31 = vld [vmem:[%s4552_s30 + $0x2b8] sm:$0xff]  ;;  %v4032_v34 = vld [vmem:[%s4552_s30 + $0x270] sm:$0xff] }
 0x17a   : > { %1398 = vmatpush.bf16.msra.mxu2 %v3972_v49  ;;  %v4010_v28 = vld [vmem:[%s4552_s30 + $0x1c0] sm:$0xff]  ;;  %v4049_v32 = vld [vmem:[%s4552_s30 + $0x2f8] sm:$0xff]  ;;  %v4040_v35 = vld [vmem:[%s4552_s30 + $0x2b0] sm:$0xff] }
 0x17b   : > { %1459 = vmatpush.bf16.msra.mxu3 %v3980_v50  ;;  %v4048_v36 = vld [vmem:[%s4552_s30 + $0x2f0] sm:$0xff]  ;;  %v4023_v37 = vld [vmem:[%s4552_s30 + $0x228] sm:$0xff]  ;;  %v4022_v41 = vld [vmem:[%s4552_s30 + $0x220] sm:$0xff] }
 0x17c   : > { %1277 = vmatpush.bf16.msra.mxu0 %v3955_v51  ;;  %v4031_v38 = vld [vmem:[%s4552_s30 + $0x268] sm:$0xff]  ;;  %v4030_v42 = vld [vmem:[%s4552_s30 + $0x260] sm:$0xff]  ;;  %v4037_v44 = vld [vmem:[%s4552_s30 + $0x298] sm:$0xff] }
 0x17d   : > { %1338 = vmatpush.bf16.msra.mxu1 %v3963_v52  ;;  %v4039_v39 = vld [vmem:[%s4552_s30 + $0x2a8] sm:$0xff]  ;;  %v4038_v43 = vld [vmem:[%s4552_s30 + $0x2a0] sm:$0xff]  ;;  %v4021_v45 = vld [vmem:[%s4552_s30 + $0x218] sm:$0xff] }
 0x17e   : > { %1399 = vmatpush.bf16.msra.mxu2 %v3971_v53  ;;  %v4047_v40 = vld [vmem:[%s4552_s30 + $0x2e8] sm:$0xff]  ;;  %v4029_v46 = vld [vmem:[%s4552_s30 + $0x258] sm:$0xff]  ;;  %v4046_v47 = vld [vmem:[%s4552_s30 + $0x2e0] sm:$0xff] }
 0x17f   : > { %1460 = vmatpush.bf16.msra.mxu3 %v3979_v54  ;;  %v4020_v48 = vld [vmem:[%s4552_s30 + $0x210] sm:$0xff]  ;;  %v4045_v50 = vld [vmem:[%s4552_s30 + $0x2d8] sm:$0xff]  ;;  %v4019_v52 = vld [vmem:[%s4552_s30 + $0x208] sm:$0xff] }
 0x180   : > { %1278 = vmatpush.bf16.msra.mxu0 %v3954_v55  ;;  %v4028_v49 = vld [vmem:[%s4552_s30 + $0x250] sm:$0xff]  ;;  %v4027_v53 = vld [vmem:[%s4552_s30 + $0x248] sm:$0xff] }
 0x181   : > { %1339 = vmatpush.bf16.msra.mxu1 %v3962_v56  ;;  %v4036_v51 = vld [vmem:[%s4552_s30 + $0x290] sm:$0xff]  ;;  %v4035_v55 = vld [vmem:[%s4552_s30 + $0x288] sm:$0xff]  ;;  %v4018_v56 = vld [vmem:[%s4552_s30 + $0x200] sm:$0xff] }
 0x182   : > { %1400 = vmatpush.bf16.msra.mxu2 %v3970_v57  ;;  %v4044_v54 = vld [vmem:[%s4552_s30 + $0x2d0] sm:$0xff]  ;;  %v4026_v57 = vld [vmem:[%s4552_s30 + $0x240] sm:$0xff] }
 0x183   : > { %1461 = vmatpush.bf16.msra.mxu3 %v3978_v58  ;;  %1279 = vmatmul.bf16.vlgmr.msra.gmra.mxu0 %v4664_v0  ;;  %v4043_v58 = vld [vmem:[%s4552_s30 + $0x2c8] sm:$0xff] }
 0x184   : > { %1515 = vmatpush.bf16.msrb.mxu0 %v3993_v60  ;;  %1340 = vmatmul.bf16.vlgmr.msra.gmra.mxu1 %v4664_v0  ;;  %v4034_v60 = vld [vmem:[%s4552_s30 + $0x280] sm:$0xff] }
 0x185   : > { %1576 = vmatpush.bf16.msrb.mxu1 %v4001_v61  ;;  %1401 = vmatmul.bf16.vlgmr.msra.gmra.mxu2 %v4664_v0  ;;  %v4042_v61 = vld [vmem:[%s4552_s30 + $0x2c0] sm:$0xff] }
 0x186   : > { %1637 = vmatpush.bf16.msrb.mxu2 %v4009_v62  ;;  %1462 = vmatmul.bf16.vlgmr.msra.gmra.mxu3 %v4664_v0 }
 0x187   : > { %1698 = vmatpush.bf16.msrb.mxu3 %v4017_v63 }
 0x188   : > { %1516 = vmatpush.bf16.msrb.mxu0 %v3992_v1 }
 0x189   : > { %1577 = vmatpush.bf16.msrb.mxu1 %v4000_v2 }
 0x18a   : > { %1638 = vmatpush.bf16.msrb.mxu2 %v4008_v3 }
 0x18b   : > { %1699 = vmatpush.bf16.msrb.mxu3 %v4016_v4 }
 0x18c   : > { %1517 = vmatpush.bf16.msrb.mxu0 %v3991_v5 }
 0x18d   : > { %1578 = vmatpush.bf16.msrb.mxu1 %v3999_v6 }
 0x18e   : > { %1639 = vmatpush.bf16.msrb.mxu2 %v4007_v7  ;;  %v4199_v7 = vld [vmem:[%s4562_s20 + $0x4] ss:$0 sm:$0xff] }
 0x18f   : > { %1700 = vmatpush.bf16.msrb.mxu3 %v4015_v8  ;;  %v4200_v8 = vld [vmem:[%s4562_s20 + $0x5] ss:$0 sm:$0xff] }
 0x190   : > { %1518 = vmatpush.bf16.msrb.mxu0 %v3990_v9 }
 0x191   : > { %1579 = vmatpush.bf16.msrb.mxu1 %v3998_v10 }
 0x192   : > { %1640 = vmatpush.bf16.msrb.mxu2 %v4006_v11 }
 0x193   : > { %1701 = vmatpush.bf16.msrb.mxu3 %v4014_v12 }
 0x194   : > { %1519 = vmatpush.bf16.msrb.mxu0 %v3989_v13  ;;  %v4197_v13 = vld [vmem:[%s4562_s20 + $0x1] ss:$0 sm:$0xff] }
 0x195   : > { %1580 = vmatpush.bf16.msrb.mxu1 %v3997_v14 }
 0x196   : > { %1641 = vmatpush.bf16.msrb.mxu2 %v4005_v15 }
 0x197   : > { %1702 = vmatpush.bf16.msrb.mxu3 %v4013_v16  ;;  %v4201_v16 = vld [vmem:[%s4562_s20 + $0x6] ss:$0 sm:$0xff] }
 0x198   : > { %1520 = vmatpush.bf16.msrb.mxu0 %v3988_v17  ;;  %v4202_v17 = vld [vmem:[%s4562_s20 + $0x7] ss:$0 sm:$0xff] }
 0x199   : > { %1581 = vmatpush.bf16.msrb.mxu1 %v3996_v18 }
 0x19a   : > { %1642 = vmatpush.bf16.msrb.mxu2 %v4004_v19 }
 0x19b   : > { %1703 = vmatpush.bf16.msrb.mxu3 %v4012_v20 }
 0x19c   : > { %1521 = vmatpush.bf16.msrb.mxu0 %v3987_v21 }
 0x19d   : > { %1582 = vmatpush.bf16.msrb.mxu1 %v3995_v22 }
 0x19e   : > { %1643 = vmatpush.bf16.msrb.mxu2 %v4003_v23 }
 0x19f   : > { %1704 = vmatpush.bf16.msrb.mxu3 %v4011_v24 }
 0x1a0   : > { %1522 = vmatpush.bf16.msrb.mxu0 %v3986_v25 }
 0x1a1   : > { %1583 = vmatpush.bf16.msrb.mxu1 %v3994_v26 }
 0x1a2   : > { %1644 = vmatpush.bf16.msrb.mxu2 %v4002_v27 }
 0x1a3   : > { %1705 = vmatpush.bf16.msrb.mxu3 %v4010_v28  ;;  %1523 = vmatmul.bf16.vlgmr.msrb.gmra.mxu0 %v4664_v0  ;;  %v4195_v28 = vld [vmem:[%s4562_s20 + $0x2] ss:$0 sm:$0xff] }
 0x1a4   : > { %1759 = vmatpush.bf16.msra.mxu0 %v4025_v29  ;;  %1584 = vmatmul.bf16.vlgmr.msrb.gmra.mxu1 %v4664_v0 }
 0x1a5   : > { %1820 = vmatpush.bf16.msra.mxu1 %v4033_v30  ;;  %1645 = vmatmul.bf16.vlgmr.msrb.gmra.mxu2 %v4664_v0  ;;  %v4198_v30 = vld [vmem:[%s4562_s20 + $0x3] ss:$0 sm:$0xff] }
 0x1a6   : > { %1706 = vmatmul.bf16.vlgmr.msrb.gmra.mxu3 %v4664_v0  ;;  %1881 = vmatpush.bf16.msra.mxu2 %v4041_v31 }
 0x1a7   : > { %1942 = vmatpush.bf16.msra.mxu3 %v4049_v32 }
 0x1a8   : > { %1760 = vmatpush.bf16.msra.mxu0 %v4024_v33 }
 0x1a9   : > { %1821 = vmatpush.bf16.msra.mxu1 %v4032_v34 }
 0x1aa   : > { %1882 = vmatpush.bf16.msra.mxu2 %v4040_v35 }
 0x1ab   : > { %1943 = vmatpush.bf16.msra.mxu3 %v4048_v36 }
 0x1ac   : > { %1761 = vmatpush.bf16.msra.mxu0 %v4023_v37 }
 0x1ad   : > { %1822 = vmatpush.bf16.msra.mxu1 %v4031_v38 }
 0x1ae   : > { %1883 = vmatpush.bf16.msra.mxu2 %v4039_v39 }
 0x1af   : > { %1944 = vmatpush.bf16.msra.mxu3 %v4047_v40 }
 0x1b0   : > { %1762 = vmatpush.bf16.msra.mxu0 %v4022_v41 }
 0x1b1   : > { %1823 = vmatpush.bf16.msra.mxu1 %v4030_v42  ;;  %v4203_v42 = vld [vmem:[%s4562_s20 + $0x8] ss:$0 sm:$0xff] }
 0x1b2   : > { %1884 = vmatpush.bf16.msra.mxu2 %v4038_v43  ;;  %v4204_v43 = vld [vmem:[%s4562_s20 + $0x9] ss:$0 sm:$0xff] }
 0x1b3   : > { %1945 = vmatpush.bf16.msra.mxu3 %v4046_v47 }
 0x1b4   : > { %1763 = vmatpush.bf16.msra.mxu0 %v4021_v45 }
 0x1b5   : > { %1824 = vmatpush.bf16.msra.mxu1 %v4029_v46 }
 0x1b6   : > { %1885 = vmatpush.bf16.msra.mxu2 %v4037_v44 }
 0x1b7   : > { %1946 = vmatpush.bf16.msra.mxu3 %v4045_v50 }
 0x1b8   : > { %1764 = vmatpush.bf16.msra.mxu0 %v4020_v48  ;;  %v4205_v48 = vld [vmem:[%s4562_s20 + $0xa] ss:$0 sm:$0xff] }
 0x1b9   : > { %1825 = vmatpush.bf16.msra.mxu1 %v4028_v49 }
 0x1ba   : > { %1886 = vmatpush.bf16.msra.mxu2 %v4036_v51 }
 0x1bb   : > { %1947 = vmatpush.bf16.msra.mxu3 %v4044_v54 }
 0x1bc   : > { %1765 = vmatpush.bf16.msra.mxu0 %v4019_v52 }
 0x1bd   : > { %1826 = vmatpush.bf16.msra.mxu1 %v4027_v53 }
 0x1be   : > { %1887 = vmatpush.bf16.msra.mxu2 %v4035_v55 }
 0x1bf   : > { %1948 = vmatpush.bf16.msra.mxu3 %v4043_v58 }
 0x1c0   : > { %1766 = vmatpush.bf16.msra.mxu0 %v4018_v56 }
 0x1c1   : > { %1827 = vmatpush.bf16.msra.mxu1 %v4026_v57 }
 0x1c2   : > { %1888 = vmatpush.bf16.msra.mxu2 %v4034_v60  ;;  %v4206_v60 = vld [vmem:[%s4562_s20 + $0xb] ss:$0 sm:$0xff] }
 0x1c3   : > { %1767 = vmatmul.bf16.vlgmr.msra.gmra.mxu0 %v4664_v0  ;;  %1949 = vmatpush.bf16.msra.mxu3 %v4042_v61 }
 0x1c4   : > { %1828 = vmatmul.bf16.vlgmr.msra.gmra.mxu1 %v4664_v0 }
 0x1c5   : > { %1889 = vmatmul.bf16.vlgmr.msra.gmra.mxu2 %v4664_v0 }
 0x1c6   : > { %1950 = vmatmul.bf16.vlgmr.msra.gmra.mxu3 %v4664_v0  ;;  %v4196_v0 = vld [vmem:[%s4562_s20] ss:$0 sm:$0xff]  ;;  %s5196_s20 = sld [smem:[#allocation38_spill]] (!%p3850_p2) }
 0x200   : > { %v1280_v62 = vpop.f32.mrf.mxu0 }
 0x201   : > { %v1341_v63 = vpop.f32.mrf.mxu1  ;;  %v1281_v23 = vadd.f32 %v4196_v0, %v1280_v62 }
 0x202   : > { %v1342_v20 = vadd.f32 %v4197_v13, %v1341_v63 }
 0x203   : > { %v1955_v33 = vpack.c.bf16 %v1281_v23, %v1281_v23 }
 0x204   : > { %v1956_v29 = vpack.c.bf16 %v1342_v20, %v1342_v20 }
 0x208   : > { %v1402_v1 = vpop.f32.mrf.mxu2  ;;  %v1282_v3 = vpop.f32.mrf.mxu0 }
 0x209   : > { %v1463_v2 = vpop.f32.mrf.mxu3  ;;  %v1343_v4 = vpop.f32.mrf.mxu1  ;;  %v1403_v36 = vadd.f32 %v4195_v28, %v1402_v1 }
 0x20a   : > { %v1464_v37 = vadd.f32 %v4198_v30, %v1463_v2  ;;  %v4207_v4 = vld [vmem:[%s5183_s21] ss:$0 sm:$0xff] }
 0x20b   : > { %v1957_v40 = vpack.c.bf16 %v1403_v36, %v1403_v36 }
 0x20c   : > { %v1958_v41 = vpack.c.bf16 %v1464_v37, %v1464_v37 }
 0x210   : > { %v1404_v5 = vpop.f32.mrf.mxu2 }
 0x211   : > { %v1465_v6 = vpop.f32.mrf.mxu3 }
 0x220   : > { %v1524_v9 = vpop.f32.mrf.mxu0 }
 0x221   : > { %v1585_v10 = vpop.f32.mrf.mxu1  ;;  %v1525_v11 = vadd.f32 %v4199_v7, %v1524_v9 }
 0x222   : > { %v1586_v12 = vadd.f32 %v4200_v8, %v1585_v10 }
 0x223   : > { %v1959_v14 = vpack.c.bf16 %v1525_v11, %v1525_v11 }
 0x224   : > { %v1960_v15 = vpack.c.bf16 %v1586_v12, %v1586_v12 }
 0x225   : > { %v1976_v18 = vsel %vm1971_vm4, %v1959_v14, 0 }
 0x226   : > { %v1995_v19 = vsel %vm1971_vm4, %v1960_v15, 0  ;;  %1985 = vmatpush.bf16.xpose.msrb.mxu0 %v1976_v18 }
 0x227   : > { %2004 = vmatpush.bf16.xpose.msrb.mxu1 %v1995_v19 }
 0x228   : > { %v1646_v21 = vpop.f32.mrf.mxu2  ;;  %v1526_v26 = vpop.f32.mrf.mxu0 }
 0x229   : > { %v1707_v22 = vpop.f32.mrf.mxu3  ;;  %v1647_v24 = vadd.f32 %v4201_v16, %v1646_v21  ;;  %v1587_v27 = vpop.f32.mrf.mxu1 }
 0x22a   : > { %v1708_v25 = vadd.f32 %v4202_v17, %v1707_v22 }
 0x22b   : > { %v1961_v31 = vpack.c.bf16 %v1647_v24, %v1647_v24 }
 0x22c   : > { %v1962_v32 = vpack.c.bf16 %v1708_v25, %v1708_v25 }
 0x22d   : > { %v2014_v34 = vsel %vm1971_vm4, %v1961_v31, 0  ;;  %3678 = vmatmul.msk.bf16.vlgmr.msrb.gmra.mxu0 %vm1971_vm4, %v1955_v33 }
 0x22e   : > { %v2033_v35 = vsel %vm1971_vm4, %v1962_v32, 0  ;;  %2023 = vmatpush.bf16.xpose.msrb.mxu2 %v2014_v34  ;;  %3679 = vmatmul.msk.bf16.vlgmr.msrb.gmra.mxu1 %vm1971_vm4, %v1956_v29 }
 0x22f   : > { %2042 = vmatpush.bf16.xpose.msrb.mxu3 %v2033_v35 }
 0x230   : > { %v1648_v38 = vpop.f32.mrf.mxu2 }
 0x231   : > { %v1709_v39 = vpop.f32.mrf.mxu3 }
 0x235   : > { %3680 = vmatmul.msk.bf16.vlgmr.msrb.gmra.mxu2 %vm1971_vm4, %v1957_v40 }
 0x236   : > { %3681 = vmatmul.msk.bf16.vlgmr.msrb.gmra.mxu3 %vm1971_vm4, %v1958_v41 }
 0x240   : > { %v1768_v44 = vpop.f32.mrf.mxu0 }
 0x241   : > { %v1829_v45 = vpop.f32.mrf.mxu1  ;;  %v1769_v46 = vadd.f32 %v4203_v42, %v1768_v44 }
 0x242   : > { %v1830_v47 = vadd.f32 %v4204_v43, %v1829_v45  ;;  %v4051_v45 = vld [vmem:[%s4557_s6 + $0x8] sm:$0xff] }
 0x243   : > { %v1963_v49 = vpack.c.bf16 %v1769_v46, %v1769_v46 }
 0x244   : > { %v1964_v50 = vpack.c.bf16 %v1830_v47, %v1830_v47 }
 0x245   : > { %v2158_v51 = vsel %vm2156_vm5, %v1963_v49, 0 }
 0x246   : > { %v2177_v52 = vsel %vm2156_vm5, %v1964_v50, 0  ;;  %2167 = vmatpush.bf16.msra.mxu0 %v2158_v51 }
 0x247   : > { %2186 = vmatpush.bf16.msra.mxu1 %v2177_v52 }
 0x248   : > { %v1890_v53 = vpop.f32.mrf.mxu2  ;;  %v1770_v55 = vpop.f32.mrf.mxu0 }
 0x249   : > { %v1891_v54 = vadd.f32 %v4205_v48, %v1890_v53  ;;  %v1831_v56 = vpop.f32.mrf.mxu1  ;;  %v1951_v61 = vpop.f32.mrf.mxu3 }
 0x24a   : > { %v1952_v63 = vadd.f32 %v4206_v60, %v1951_v61  ;;  %2271 = vmatpush.bf16.msrb.mxu0 %v4051_v45 }
 0x24b   : > { %v1965_v57 = vpack.c.bf16 %v1891_v54, %v1891_v54 }
 0x24c   : > { %v1966_v1 = vpack.c.bf16 %v1952_v63, %v1952_v63 }
 0x24d   : > { %v2196_v58 = vsel %vm2156_vm5, %v1965_v57, 0 }
 0x24e   : > { %2205 = vmatpush.bf16.msra.mxu2 %v2196_v58  ;;  %v2215_v2 = vsel %vm2156_vm5, %v1966_v1, 0 }
 0x24f   : > { %2224 = vmatpush.bf16.msra.mxu3 %v2215_v2 }
 0x250   : > { %v1892_v62 = vpop.f32.mrf.mxu2 }
 0x251   : > { %v1953_v3 = vpop.f32.mrf.mxu3 }
 0x2aa   : > { %v1987_v5 = vpop.f32.mrf.mxu0 }
 0x2ab   : > { %v2006_v6 = vpop.f32.mrf.mxu1  ;;  %v1988_v7 = vadd.f32 %v4207_v4, %v1987_v5 }
 0x2ac   : > { %v2007_v9 = vadd.f32 %v4207_v4, %v2006_v6 }
 0x2ad   : > { %v2049_v8 = vsel %vm2048_vm6, %v1988_v7, -inf }
 0x2ae   : > { %2050 = vmax.xlane.f32.xlu1 %v2049_v8  ;;  %v2052_v12 = vsel %vm2048_vm6, %v2007_v9, -inf }
 0x2b2   : > { %v1989_v10 = vpop.f32.mrf.mxu0 }
 0x2b3   : > { %v2008_v11 = vpop.f32.mrf.mxu1 }
 0x2b6   : > { %2053 = vmax.xlane.f32.xlu1 %v2052_v12 }
 0x2b8   : > { %v2025_v13 = vpop.f32.mrf.mxu2 }
 0x2b9   : > { %v2044_v14 = vpop.f32.mrf.mxu3  ;;  %v2026_v15 = vadd.f32 %v4207_v4, %v2025_v13 }
 0x2ba   : > { %v2045_v16 = vadd.f32 %v4207_v4, %v2044_v14 }
 0x2bb   : > { %v2055_v0 = vsel %vm2048_vm6, %v2026_v15, -inf }
 0x2bc   : > { %2056 = vmax.xlane.f32.xlu0 %v2055_v0  ;;  %v2058_v19 = vsel %vm2048_vm6, %v2045_v16, -inf }
 0x2c0   : > { %v2027_v17 = vpop.f32.mrf.mxu2 }
 0x2c1   : > { %v2046_v18 = vpop.f32.mrf.mxu3 }
 0x2c4   : > { %2059 = vmax.xlane.f32.xlu0 %v2058_v19 }
 0x321   : > { %v2051_v20 = vpop.xlane.xlu1 %2050 }
 0x322   : > { %v2061_v21 = vsub.f32 %v1988_v7, %v2051_v20 }
 0x324   : > { %v2065_v22 = vmul.f32 1.442695, %v2061_v21 }
 0x326   : > { %4214 = vpow2.f32 %v2065_v22 }
 0x329   : > { %v2054_v23 = vpop.xlane.xlu1 %2053 }
 0x32a   : > { %v2062_v24 = vsub.f32 %v2007_v9, %v2054_v23 }
 0x32c   : > { %v4215_v25 = vpop.eup %4214  ;;  %v2067_v26 = vmul.f32 1.442695, %v2062_v24 }
 0x32d   : > { %v2073_v28 = vsel %vm2048_vm6, %v4215_v25, 0.0 }
 0x32e   : > { %4216 = vpow2.f32 %v2067_v26  ;;  %2074 = vadd.xlane.f32.xlu0 %v2073_v28 }
 0x32f   : > { %v2057_v27 = vpop.xlane.xlu0 %2056 }
 0x330   : > { %v2063_v29 = vsub.f32 %v2026_v15, %v2057_v27 }
 0x332   : > { %v2069_v30 = vmul.f32 1.442695, %v2063_v29 }
 0x334   : > { %4218 = vpow2.f32 %v2069_v30  ;;  %v4772_v31 = vpop.eup %4216  ;;  %v4050_v30 = vld [vmem:[%s4557_s6] sm:$0xff] }
 0x335   : > { %v2076_v33 = vsel %vm2048_vm6, %v4772_v31, 0.0  ;;  %2272 = vmatpush.bf16.msrb.mxu0 %v4050_v30  ;;  %v4066_v30 = vld [vmem:[%s5184_s25 + $0x44] sm:$0xf] }
 0x336   : > { %2077 = vadd.xlane.f32.xlu1 %v2076_v33  ;;  %v4055_v33 = vld [vmem:[%s4557_s6 + $0x28] sm:$0xff] }
 0x337   : > { %v2060_v32 = vpop.xlane.xlu0 %2059  ;;  %2327 = vmatpush.bf16.msrb.mxu2 %v4055_v33 }
 0x338   : > { %v2064_v34 = vsub.f32 %v2045_v16, %v2060_v32  ;;  %v4052_v32 = vld [vmem:[%s4557_s6 + $0x10] sm:$0xff] }
 0x33a   : > { %v4776_v35 = vpop.eup %4218  ;;  %v2071_v36 = vmul.f32 1.442695, %v2064_v34  ;;  %v4054_v34 = vld [vmem:[%s4557_s6 + $0x20] sm:$0xff] }
 0x33b   : > { %v2079_v37 = vsel %vm2048_vm6, %v4776_v35, 0.0  ;;  %2328 = vmatpush.bf16.msrb.mxu2 %v4054_v34  ;;  %v3748_v34 = vld [vmem:[%s5184_s25 + $0x30] sm:$0xf] }
 0x33c   : > { %4220 = vpow2.f32 %v2071_v36  ;;  %2080 = vadd.xlane.f32.xlu2 %v2079_v37  ;;  %v4056_v36 = vld [vmem:[%s4557_s6 + $0x30] sm:$0xff] }
 0x342   : > { %v4780_v38 = vpop.eup %4220 }
 0x343   : > { %v2082_v39 = vsel %vm2048_vm6, %v4780_v38, 0.0 }
 0x344   : > { %2083 = vadd.xlane.f32.xlu2 %v2082_v39 }
 0x3a1   : > { %v2075_v40 = vpop.xlane.xlu0 %2074 }
 0x3a2   : > { %4222 = vrcp.f32 %v2075_v40  ;;  %v2096_v46 = vand.u32 2147483648, %v2075_v40  ;;  %v2094_v48 = vand.u32 2147483647, %v2075_v40  ;;  %vm2090_vm8 = vweird.f32 %v2075_v40 }
 0x3a4   : > { %v2097_v52 = vor.u32 1.1754944e-38, %v2096_v46  ;;  %vm2095_vm10 = vcmp.eq.f32.partialorder %v2094_v48, 8.507059e+37 }
 0x3a8   : > { %v4223_v41 = vpop.eup %4222 }
 0x3a9   : > { %v2086_v42 = vmul.f32 %v4223_v41, %v2075_v40  ;;  %v2078_v43 = vpop.xlane.xlu1 %2077  ;;  %vm2091_vm7 = vweird.f32 %v4223_v41 }
 0x3aa   : > { %4224 = vrcp.f32 %v2078_v43  ;;  %vm2092_vm9 = vmor %vm2090_vm8, %vm2091_vm7  ;;  %v2109_v60 = vand.u32 2147483647, %v2078_v43  ;;  %v2111_v61 = vand.u32 2147483648, %v2078_v43  ;;  %vm2105_vm12 = vweird.f32 %v2078_v43 }
 0x3ab   : > { %v2087_v44 = vsub.f32 1.0, %v2086_v42 }
 0x3ac   : > { %vm2110_vm14 = vcmp.eq.f32.partialorder %v2109_v60, 8.507059e+37  ;;  %v2112_v5 = vor.u32 1.1754944e-38, %v2111_v61 }
 0x3ad   : > { %v2088_v47 = vmul.f32 %v4223_v41, %v2087_v44 }
 0x3af   : > { %v2081_v49 = vpop.xlane.xlu2 %2080  ;;  %v2089_v50 = vadd.f32 %v4223_v41, %v2088_v47 }
 0x3b0   : > { %4226 = vrcp.f32 %v2081_v49  ;;  %v4225_v51 = vpop.eup %4224  ;;  %v2126_v6 = vand.u32 2147483648, %v2081_v49  ;;  %v2124_v9 = vand.u32 2147483647, %v2081_v49  ;;  %vm2120_vm0 = vweird.f32 %v2081_v49 }
 0x3b1   : > { %v2093_v53 = vsel %vm2092_vm9, %v4223_v41, %v2089_v50  ;;  %v2101_v54 = vmul.f32 %v4225_v51, %v2078_v43  ;;  %vm2106_vm11 = vweird.f32 %v4225_v51 }
 0x3b2   : > { %v2098_v55 = vsel %vm2095_vm10, %v2097_v52, %v2093_v53  ;;  %vm2107_vm13 = vmor %vm2105_vm12, %vm2106_vm11  ;;  %v2127_v14 = vor.u32 1.1754944e-38, %v2126_v6  ;;  %vm2125_vm2 = vcmp.eq.f32.partialorder %v2124_v9, 8.507059e+37  ;;  %v3782_v6 = vld [vmem:[%s5184_s25 + $0x78] sm:$0xf0] }
 0x3b3   : > { %v2099_v56 = vmul.f32 %v4215_v25, %v2098_v55  ;;  %v2102_v57 = vsub.f32 1.0, %v2101_v54 }
 0x3b5   : > { %2145 = vst.msk [vmem:[%s4614_s18] sm:$0xff] %vm2048_vm6, %v2099_v56  ;;  %v2103_v62 = vmul.f32 %v4225_v51, %v2102_v57  ;;  %v2149_v2 = vpack.c.bf16 %v2099_v56, %v2099_v56  ;;  %v4208_v56 = vld [vmem:[%s5186_s3] ss:$0 sm:$0xff]  ;;  %s5198_s3 = sld [smem:[#allocation39_spill]] (!%p3850_p2) }
 0x3b6   : > { %v4227_v58 = vpop.eup %4226 }
 0x3b7   : > { %v2116_v63 = vmul.f32 %v4227_v58, %v2081_v49  ;;  %v2084_v1 = vpop.xlane.xlu2 %2083  ;;  %v2104_v3 = vadd.f32 %v4225_v51, %v2103_v62  ;;  %3682 = vmatmul.msk.bf16.vlgmr.msra.gmra.mxu0 %vm2048_vm6, %v2149_v2  ;;  %vm2121_vm15 = vweird.f32 %v4227_v58  ;;  %v3780_v2 = vld [vmem:[%s5184_s25 + $0x70] sm:$0xf] }
 0x3b8   : > { %4228 = vrcp.f32 %v2084_v1  ;;  %vm2122_vm1 = vmor %vm2120_vm0, %vm2121_vm15  ;;  %v2141_v20 = vand.u32 2147483648, %v2084_v1  ;;  %v2139_v22 = vand.u32 2147483647, %v2084_v1  ;;  %vm2135_vm5 = vweird.f32 %v2084_v1 }
 0x3b9   : > { %v2117_v4 = vsub.f32 1.0, %v2116_v63  ;;  %v2108_v7 = vsel %vm2107_vm13, %v4225_v51, %v2104_v3  ;;  %v4073_v3 = vld [vmem:[%s5184_s25 + $0x74] sm:$0xf0] }
 0x3ba   : > { %v2113_v10 = vsel %vm2110_vm14, %v2112_v5, %v2108_v7  ;;  %v2142_v25 = vor.u32 1.1754944e-38, %v2141_v20  ;;  %vm2140_vm8 = vcmp.eq.f32.partialorder %v2139_v22, 8.507059e+37  ;;  %v3781_v5 = vor.u32 %v4073_v3, %v3780_v2  ;;  %v3774_v20 = vld [vmem:[%s5184_s25 + $0x68] sm:$0xf0]  ;;  %v3764_v22 = vld [vmem:[%s5184_s25 + $0x50] sm:$0xf] }
 0x3bb   : > { %v2118_v8 = vmul.f32 %v4227_v58, %v2117_v4  ;;  %v2114_v11 = vmul.f32 %v4772_v31, %v2113_v10  ;;  %v4053_v31 = vld [vmem:[%s4557_s6 + $0x18] sm:$0xff]  ;;  %v4072_v4 = vld [vmem:[%s5184_s25 + $0x74] sm:$0xf] }
 0x3bc   : > { %2299 = vmatpush.bf16.msrb.mxu1 %v4053_v31  ;;  %v3785_v7 = vor.u32 %v4072_v4, %v3782_v6  ;;  %2511 = vmatpush.bf16.msra.mxu0 %v3781_v5 }
 0x3bd   : > { %v2119_v12 = vadd.f32 %v4227_v58, %v2118_v8  ;;  %2146 = vst.msk [vmem:[%s4614_s18 + $0x8] sm:$0xff] %vm2048_vm6, %v2114_v11  ;;  %v2150_v16 = vpack.c.bf16 %v2114_v11, %v2114_v11 }
 0x3be   : > { %v4229_v13 = vpop.eup %4228 }
 0x3bf   : > { %v2123_v15 = vsel %vm2122_vm1, %v4227_v58, %v2119_v12  ;;  %v2131_v0 = vmul.f32 %v4229_v13, %v2084_v1  ;;  %3683 = vmatmul.msk.bf16.vlgmr.msra.gmra.mxu1 %vm2048_vm6, %v2150_v16  ;;  %vm2136_vm3 = vweird.f32 %v4229_v13  ;;  %v4339_v1 = vmov 128.0   ;;  %v3772_v16 = vld [vmem:[%s5184_s25 + $0x60] sm:$0xf] }
 0x3c0   : > { %v2128_v17 = vsel %vm2125_vm2, %v2127_v14, %v2123_v15  ;;  %vm2137_vm7 = vmor %vm2135_vm5, %vm2136_vm3  ;;  %2300 = vmatpush.bf16.msrb.mxu1 %v4052_v32  ;;  %4230 = vrcp.f32 %v4339_v1  ;;  %v3758_v32 = vld [vmem:[%s5184_s25 + $0x48] sm:$0xf0] }
 0x3c1   : > { %v2129_v18 = vmul.f32 %v4776_v35, %v2128_v17  ;;  %v2132_v19 = vsub.f32 1.0, %v2131_v0  ;;  %v4057_v35 = vld [vmem:[%s4557_s6 + $0x38] sm:$0xff]  ;;  %v4071_v17 = vld [vmem:[%s5184_s25 + $0x64] sm:$0xf0]  ;;  %v3761_v33 = vor.u32 %v4066_v30, %v3758_v32 }
 0x3c2   : > { %2355 = vmatpush.bf16.msrb.mxu3 %v4057_v35  ;;  %v4065_v35 = vld [vmem:[%s5184_s25 + $0x34] sm:$0xf0] }
 0x3c3   : > { %2147 = vst.msk [vmem:[%s4614_s18 + $0x10] sm:$0xff] %vm2048_vm6, %v2129_v18  ;;  %v2133_v21 = vmul.f32 %v4229_v13, %v2132_v19  ;;  %v2151_v23 = vpack.c.bf16 %v2129_v18, %v2129_v18  ;;  %v4070_v18 = vld [vmem:[%s5184_s25 + $0x64] sm:$0xf]  ;;  %v3773_v19 = vor.u32 %v4071_v17, %v3772_v16  ;;  %v4087_v16 = vld [vmem:[%s4591_s1 + $0x68] sm:$0xff] }
 0x3c4   : > { %2524 = vmatpush.bf16.msra.mxu1 %v3785_v7  ;;  %v4209_v7 = vld [vmem:[%s5188_s28] ss:$0 sm:$0xff] }
 0x3c5   : > { %v2134_v24 = vadd.f32 %v4229_v13, %v2133_v21  ;;  %3684 = vmatmul.msk.bf16.vlgmr.msra.gmra.mxu2 %vm2048_vm6, %v2151_v23  ;;  %v3777_v21 = vor.u32 %v4070_v18, %v3774_v20  ;;  %2512 = vmatpush.bf16.msra.mxu0 %v3773_v19  ;;  %v4069_v23 = vld [vmem:[%s5184_s25 + $0x54] sm:$0xf0]  ;;  %v4078_v17 = vld [vmem:[%s4591_s1 + $0x20] sm:$0xff] }
 0x3c6   : > { %2356 = vmatpush.bf16.msrb.mxu3 %v4056_v36  ;;  %v4231_v8 = vpop.eup %4230  ;;  %v4064_v36 = vld [vmem:[%s5184_s25 + $0x34] sm:$0xf]  ;;  %v4086_v18 = vld [vmem:[%s4591_s1 + $0x60] sm:$0xff]  ;;  %v4077_v19 = vld [vmem:[%s4591_s1 + $0x18] sm:$0xff] }
 0x3c7   : > { %v2138_v26 = vsel %vm2137_vm7, %v4229_v13, %v2134_v24  ;;  %v2376_v9 = vmul.f32 128.0, %v4231_v8  ;;  %v4068_v24 = vld [vmem:[%s5184_s25 + $0x54] sm:$0xf]  ;;  %v4085_v20 = vld [vmem:[%s4591_s1 + $0x58] sm:$0xff] }
 0x3c8   : > { %v2143_v27 = vsel %vm2140_vm8, %v2142_v25, %v2138_v26  ;;  %2525 = vmatpush.bf16.msra.mxu1 %v3777_v21  ;;  %v3765_v25 = vor.u32 %v4069_v23, %v3764_v22  ;;  %v3766_v26 = vld [vmem:[%s5184_s25 + $0x58] sm:$0xf0]  ;;  %v4076_v21 = vld [vmem:[%s4591_s1 + $0x10] sm:$0xff]  ;;  %v4075_v23 = vld [vmem:[%s4591_s1 + $0x8] sm:$0xff] }
 0x3c9   : > { %v2144_v28 = vmul.f32 %v4780_v38, %v2143_v27  ;;  %v2377_v10 = vsub.f32 1.0, %v2376_v9  ;;  %v3769_v27 = vor.u32 %v4068_v24, %v3766_v26  ;;  %v4084_v22 = vld [vmem:[%s4591_s1 + $0x50] sm:$0xff]  ;;  %v4083_v24 = vld [vmem:[%s4591_s1 + $0x48] sm:$0xff]  ;;  %v4082_v26 = vld [vmem:[%s4591_s1 + $0x40] sm:$0xff] }
 0x3ca   : > { %2513 = vmatpush.bf16.msra.mxu0 %v3765_v25  ;;  %v4074_v25 = vld [vmem:[%s4591_s1] sm:$0xff] }
 0x3cb   : > { %2148 = vst.msk [vmem:[%s4614_s18 + $0x18] sm:$0xff] %vm2048_vm6, %v2144_v28  ;;  %v2152_v29 = vpack.c.bf16 %v2144_v28, %v2144_v28  ;;  %v3756_v28 = vld [vmem:[%s5184_s25 + $0x40] sm:$0xf] }
 0x3cc   : > { %2526 = vmatpush.bf16.msra.mxu1 %v3769_v27  ;;  %v2425_v27 = vld [vmem:[%s4586_s15] sm:$0x3] }
 0x3cd   : > { %3685 = vmatmul.msk.bf16.vlgmr.msra.gmra.mxu3 %vm2048_vm6, %v2152_v29  ;;  %v4067_v29 = vld [vmem:[%s5184_s25 + $0x44] sm:$0xf0] }
 0x3ce   : > { %v3757_v31 = vor.u32 %v4067_v29, %v3756_v28  ;;  %v2427_v28 = vperm.slane %v2425_v27, 0  ;;  %v2428_v29 = vperm.slane %v2425_v27, 1 }
 0x3d0   : > { %2514 = vmatpush.bf16.msra.mxu0 %v3757_v31  ;;  %2527 = vmatpush.bf16.msra.mxu1 %v3761_v33 }
 0x434   : > { %v2169_v37 = vpop.f32.mrf.mxu0 }
 0x435   : > { %v2230_v38 = vpack.c.bf16 %v2169_v37, %v2169_v37  ;;  %v3749_v37 = vor.u32 %v4065_v35, %v3748_v34 }
 0x437   : > { %3694 = vmatmul.msk.bf16.vlgmr.msrb.gmra.mxu0 %vm1971_vm4, %v2230_v38  ;;  %v3750_v38 = vld [vmem:[%s5184_s25 + $0x38] sm:$0xf0] }
 0x438   : > { %2515 = vmatpush.bf16.msra.mxu0 %v3749_v37 }
 0x43c   : > { %v2171_v39 = vpop.f32.mrf.mxu0  ;;  %v2188_v40 = vpop.f32.mrf.mxu1 }
 0x43d   : > { %v2231_v41 = vpack.c.bf16 %v2188_v40, %v2188_v40  ;;  %v3753_v39 = vor.u32 %v4064_v36, %v3750_v38  ;;  %v3740_v40 = vld [vmem:[%s5184_s25 + $0x20] sm:$0xf] }
 0x43f   : > { %3703 = vmatmul.msk.bf16.vlgmr.msrb.gmra.mxu1 %vm1971_vm4, %v2231_v41  ;;  %v4063_v41 = vld [vmem:[%s5184_s25 + $0x24] sm:$0xf0] }
 0x440   : > { %2528 = vmatpush.bf16.msra.mxu1 %v3753_v39 }
 0x444   : > { %v2190_v42 = vpop.f32.mrf.mxu1 }
 0x445   : > { %v4062_v42 = vld [vmem:[%s5184_s25 + $0x24] sm:$0xf] }
 0x448   : > { %v2207_v43 = vpop.f32.mrf.mxu2 }
 0x449   : > { %v2232_v44 = vpack.c.bf16 %v2207_v43, %v2207_v43  ;;  %v3741_v43 = vor.u32 %v4063_v41, %v3740_v40 }
 0x44b   : > { %3712 = vmatmul.msk.bf16.vlgmr.msrb.gmra.mxu2 %vm1971_vm4, %v2232_v44  ;;  %v3742_v44 = vld [vmem:[%s5184_s25 + $0x28] sm:$0xf0]  ;;  %2516 = vmatpush.bf16.msra.mxu0 %v3741_v43 }
 0x450   : > { %v2209_v45 = vpop.f32.mrf.mxu2  ;;  %v2226_v46 = vpop.f32.mrf.mxu3 }
 0x451   : > { %v2233_v47 = vpack.c.bf16 %v2226_v46, %v2226_v46  ;;  %v3745_v45 = vor.u32 %v4062_v42, %v3742_v44  ;;  %v3732_v46 = vld [vmem:[%s5184_s25 + $0x10] sm:$0xf] }
 0x453   : > { %3721 = vmatmul.msk.bf16.vlgmr.msrb.gmra.mxu3 %vm1971_vm4, %v2233_v47  ;;  %vm2380_vm4 = vweird.f32 %v4231_v8  ;;  %2529 = vmatpush.bf16.msra.mxu1 %v3745_v45  ;;  %v4061_v47 = vld [vmem:[%s5184_s25 + $0x14] sm:$0xf0] }
 0x458   : > { %v2228_v48 = vpop.f32.mrf.mxu3 }
 0x459   : > { %v4060_v48 = vld [vmem:[%s5184_s25 + $0x14] sm:$0xf] }
 0x4b4   : > { %v2274_v49 = vpop.f32.mrf.mxu0 }
 0x4bc   : > { %v2276_v50 = vpop.f32.mrf.mxu0  ;;  %v2302_v51 = vpop.f32.mrf.mxu1 }
 0x4bd   : > { %v2362_v54 = vadd.f32 %v2302_v51, %v2274_v49  ;;  %v3733_v49 = vor.u32 %v4061_v47, %v3732_v46  ;;  %v3734_v50 = vld [vmem:[%s5184_s25 + $0x18] sm:$0xf0] }
 0x4be   : > { %v3737_v51 = vor.u32 %v4060_v48, %v3734_v50 }
 0x4bf   : > { %2517 = vmatpush.bf16.msra.mxu0 %v3733_v49 }
 0x4c0   : > { %2530 = vmatpush.bf16.msra.mxu1 %v3737_v51 }
 0x4c4   : > { %v2304_v52 = vpop.f32.mrf.mxu1 }
 0x4c5   : > { %v3724_v52 = vld [vmem:[%s5184_s25] sm:$0xf] }
 0x4ce   : > { %v2330_v53 = vpop.f32.mrf.mxu2 }
 0x4cf   : > { %v2363_v55 = vadd.f32 %v2362_v54, %v2330_v53  ;;  %v4059_v53 = vld [vmem:[%s5184_s25 + $0x4] sm:$0xf0]  ;;  %v4058_v54 = vld [vmem:[%s5184_s25 + $0x4] sm:$0xf] }
 0x4d6   : > { %v2332_v57 = vpop.f32.mrf.mxu2  ;;  %v2358_v58 = vpop.f32.mrf.mxu3 }
 0x4d7   : > { %v2364_v60 = vadd.f32 %v2363_v55, %v2358_v58  ;;  %v3725_v55 = vor.u32 %v4059_v53, %v3724_v52  ;;  %v4081_v58 = vld [vmem:[%s4591_s1 + $0x38] sm:$0xff] }
 0x4d8   : > { %2689 = vmatpush.bf16.msra.mxu2 %v4081_v58 }
 0x4d9   : > { %v2369_v61 = vadd.f32 %v4208_v56, %v2364_v60  ;;  %v3726_v56 = vld [vmem:[%s5184_s25 + $0x8] sm:$0xf0]  ;;  %2518 = vmatpush.bf16.msra.mxu0 %v3725_v55  ;;  %v4089_v60 = vld [vmem:[%s4591_s1 + $0x78] sm:$0xff] }
 0x4da   : > { %v3729_v57 = vor.u32 %v4058_v54, %v3726_v56  ;;  %2702 = vmatpush.bf16.msra.mxu3 %v4089_v60  ;;  %v4211_v56 = vld [vmem:[%s916_s17] ss:$0 sm:$0xff] }
 0x4db   : > { %v2370_v62 = vadd.f32 %v2369_v61, %v4656_v59  ;;  %v2378_v59 = vmul.f32 %v4231_v8, %v2377_v10  ;;  %v4210_v10 = vld [vmem:[%s5190_s7] ss:$0 sm:$0xff] }
 0x4dc   : > { %2531 = vmatpush.bf16.msra.mxu1 %v3729_v57 }
 0x4dd   : > { %2373 = vadd.xlane.f32.xlu2 %v2370_v62  ;;  %v2379_v11 = vadd.f32 %v4231_v8, %v2378_v59 }
 0x4de   : > { %v2360_v63 = vpop.f32.mrf.mxu3 }
 0x4df   : > { %v4821_v12 = vsel %vm2380_vm4, %v4231_v8, %v2379_v11 }
 0x550   : > { %v2374_v13 = vpop.xlane.xlu2 %2373 }
 0x551   : > { %v2382_v14 = vmul.f32 %v4821_v12, %v2374_v13 }
 0x553   : > { %v4824_v15 = vsub.f32 %v2370_v62, %v2382_v14  ;;  %v4080_v14 = vld [vmem:[%s4591_s1 + $0x30] sm:$0xff] }
 0x554   : > { %2690 = vmatpush.bf16.msra.mxu2 %v4080_v14 }
 0x555   : > { %v2384_v0 = vmul.f32 %v4824_v15, %v4824_v15 }
 0x557   : > { %2385 = vadd.xlane.f32.xlu0 %v2384_v0  ;;  %v4088_v0 = vld [vmem:[%s4591_s1 + $0x70] sm:$0xff] }
 0x558   : > { %2703 = vmatpush.bf16.msra.mxu3 %v4088_v0  ;;  %v4212_v0 = vld [vmem:[%s919_s22] ss:$0 sm:$0xff]  ;;  %s5195_s22 = sld [smem:[#allocation36_spill]] (!%p3850_p2) }
 0x55c   : > { %2704 = vmatpush.bf16.msra.mxu3 %v4087_v16 }
 0x560   : > { %2705 = vmatpush.bf16.msra.mxu3 %v4086_v18 }
 0x564   : > { %2706 = vmatpush.bf16.msra.mxu3 %v4085_v20 }
 0x568   : > { %2707 = vmatpush.bf16.msra.mxu3 %v4084_v22 }
 0x56c   : > { %2708 = vmatpush.bf16.msra.mxu3 %v4083_v24 }
 0x570   : > { %2709 = vmatpush.bf16.msra.mxu3 %v4082_v26 }
 0x5ca   : > { %v2386_v61 = vpop.xlane.xlu0 %2385 }
 0x5cb   : > { %v2387_v62 = vmul.f32 %v2386_v61, %v4821_v12 }
 0x5cd   : > { %v2388_v63 = vadd.f32 1e-12, %v2387_v62 }
 0x5cf   : > { %4232 = vrsqrt.f32 %v2388_v63  ;;  %vm2395_vm9 = vweird.f32 %v2388_v63 }
 0x5d5   : > { %v4233_v1 = vpop.eup %4232 }
 0x5d6   : > { %v2390_v2 = vmul.f32 %v4233_v1, %v2388_v63  ;;  %vm2396_vm6 = vweird.f32 %v4233_v1 }
 0x5d7   : > { %vm2397_vm10 = vmor %vm2395_vm9, %vm2396_vm6 }
 0x5d8   : > { %v2391_v3 = vmul.f32 %v4233_v1, %v2390_v2 }
 0x5da   : > { %v2392_v4 = vmul.f32 0.5, %v2391_v3 }
 0x5dc   : > { %v2393_v5 = vsub.f32 1.5, %v2392_v4 }
 0x5de   : > { %v2394_v6 = vmul.f32 %v4233_v1, %v2393_v5 }
 0x5e0   : > { %v2398_v8 = vsel %vm2397_vm10, %v4233_v1, %v2394_v6 }
 0x5e1   : > { %v2399_v9 = vmul.f32 %v2398_v8, %v4824_v15  ;;  %v4079_v15 = vld [vmem:[%s4591_s1 + $0x28] sm:$0xff] }
 0x5e2   : > { %2691 = vmatpush.bf16.msra.mxu2 %v4079_v15 }
 0x5e3   : > { %v2403_v59 = vmul.f32 %v4209_v7, %v2399_v9 }
 0x5e5   : > { %v4870_v11 = vadd.f32 %v4210_v10, %v2403_v59 }
 0x5e6   : > { %2692 = vmatpush.bf16.msra.mxu2 %v4078_v17 }
 0x5e7   : > { %v2408_v13 = vpack.c.bf16 %v4870_v11, %v4870_v11 }
 0x5e9   : > { %2519 = vmatmul.bf16.vlgmr.msra.gmra.mxu0 %v2408_v13  ;;  %2532 = vmatmul.bf16.vlgmr.msra.gmra.mxu1 %v2408_v13 }
 0x5ea   : > { %2693 = vmatpush.bf16.msra.mxu2 %v4077_v19 }
 0x5ee   : > { %2694 = vmatpush.bf16.msra.mxu2 %v4076_v21 }
 0x5f2   : > { %2695 = vmatpush.bf16.msra.mxu2 %v4075_v23 }
 0x5f6   : > { %2696 = vmatpush.bf16.msra.mxu2 %v4074_v25 }
 0x666   : > { %v2520_v30 = vpop.f32.mrf.mxu0  ;;  %v2533_v31 = vpop.f32.mrf.mxu1 }
 0x667   : > { %v2521_v32 = vadd.f32 %v2520_v30, %v2427_v28  ;;  %v2534_v33 = vadd.f32 %v2533_v31, %v2428_v29 }
 0x669   : > { %v2537_v34 = vmul.f32 %v2521_v32, %v2521_v32  ;;  %v2538_v35 = vmul.f32 %v2534_v33, %v2534_v33 }
 0x66b   : > { %v2539_v36 = vmul.f32 %v2537_v34, %v2521_v32  ;;  %v2540_v37 = vmul.f32 %v2538_v35, %v2534_v33 }
 0x66d   : > { %v2541_v38 = vmul.f32 0.044715, %v2539_v36  ;;  %v2542_v39 = vmul.f32 0.044715, %v2540_v37 }
 0x66e   : > { %v2522_v40 = vpop.f32.mrf.mxu0  ;;  %v2535_v41 = vpop.f32.mrf.mxu1 }
 0x66f   : > { %v2543_v42 = vadd.f32 %v2541_v38, %v2521_v32  ;;  %v2544_v43 = vadd.f32 %v2542_v39, %v2534_v33 }
 0x671   : > { %v2545_v44 = vmul.f32 0.7978846, %v2543_v42  ;;  %v2546_v45 = vmul.f32 0.7978846, %v2544_v43 }
 0x673   : > { %4234 = vtanh.f32 %v2545_v44 }
 0x674   : > { %4236 = vtanh.f32 %v2546_v45 }
 0x679   : > { %v4235_v46 = vpop.eup %4234 }
 0x67a   : > { %v4237_v47 = vpop.eup %4236  ;;  %v2549_v48 = vadd.f32 1.0, %v4235_v46 }
 0x67b   : > { %v2550_v49 = vadd.f32 1.0, %v4237_v47 }
 0x67c   : > { %v2551_v50 = vmul.f32 0.5, %v2549_v48 }
 0x67d   : > { %v2552_v51 = vmul.f32 0.5, %v2550_v49 }
 0x67e   : > { %v2553_v52 = vmul.f32 %v2551_v50, %v2521_v32 }
 0x67f   : > { %v2554_v53 = vmul.f32 %v2552_v51, %v2534_v33 }
 0x680   : > { %v2555_v54 = vpack.c.bf16 %v2553_v52, %v2553_v52 }
 0x681   : > { %v2556_v55 = vpack.c.bf16 %v2554_v53, %v2554_v53 }
 0x682   : > { %2697 = vmatmul.bf16.vlgmr.msra.gmra.mxu2 %v2555_v54 }
 0x683   : > { %2710 = vmatmul.bf16.vlgmr.msra.gmra.mxu3 %v2556_v55 }
 0x705   : > { %v2698_v57 = vpop.f32.mrf.mxu2 }
 0x706   : > { %v2699_v58 = vadd.f32 %v4211_v56, %v2698_v57  ;;  %v2711_v60 = vpop.f32.mrf.mxu3 }
 0x708   : > { %v2712_v61 = vadd.f32 %v2711_v60, %v2699_v58 }
 0x70a   : > { %v2715_v62 = vadd.f32 %v2712_v61, %v4870_v11 }
 0x70c   : > { %2718 = vadd.xlane.f32.xlu1 %v2715_v62 }
 0x70d   : > { %v2700_v63 = vpop.f32.mrf.mxu2 }
 0x70e   : > { %v2713_v1 = vpop.f32.mrf.mxu3 }
 0x77f   : > { %v2719_v2 = vpop.xlane.xlu1 %2718 }
 0x780   : > { %v2720_v3 = vmul.f32 %v2719_v2, %v4821_v12 }
 0x782   : > { %v2721_v4 = vsub.f32 %v2715_v62, %v2720_v3 }
 0x784   : > { %v2722_v5 = vmul.f32 %v2721_v4, %v2721_v4 }
 0x786   : > { %2723 = vadd.xlane.f32.xlu2 %v2722_v5 }
 0x7f9   : > { %v2724_v6 = vpop.xlane.xlu2 %2723 }
 0x7fa   : > { %v2725_v7 = vmul.f32 %v2724_v6, %v4821_v12  ;;  %v4213_v12 = vld [vmem:[%s922_s4] ss:$0 sm:$0xff] }
 0x7fc   : > { %v2726_v8 = vadd.f32 1e-12, %v2725_v7 }
 0x7fe   : > { %4238 = vrsqrt.f32 %v2726_v8  ;;  %vm2733_vm12 = vweird.f32 %v2726_v8 }
 0x804   : > { %v4239_v9 = vpop.eup %4238 }
 0x805   : > { %v2728_v10 = vmul.f32 %v4239_v9, %v2726_v8  ;;  %vm2734_vm11 = vweird.f32 %v4239_v9 }
 0x806   : > { %vm2735_vm13 = vmor %vm2733_vm12, %vm2734_vm11 }
 0x807   : > { %v2729_v59 = vmul.f32 %v4239_v9, %v2728_v10 }
 0x809   : > { %v2730_v11 = vmul.f32 0.5, %v2729_v59 }
 0x80b   : > { %v2731_v13 = vsub.f32 1.5, %v2730_v11 }
 0x80d   : > { %v2732_v14 = vmul.f32 %v4239_v9, %v2731_v13 }
 0x80f   : > { %v2736_v15 = vsel %vm2735_vm13, %v4239_v9, %v2732_v14 }
 0x810   : > { %v2737_v16 = vmul.f32 %v2736_v15, %v2721_v4 }
 0x812   : > { %v2741_v17 = vmul.f32 %v4212_v0, %v2737_v16  ;;  %2750 = sbr.rel (%p3850_p2) target bundleno = 2380 (0x94c), region = 108 }
 0x814   : > { %v2745_v18 = vadd.f32 %v4213_v12, %v2741_v17 }
 0x816   : > { %2746 = vst [vmem:[#allocation2] sm:$0xff] %v2745_v18 }
 0x817   : > { %2751 = vst [vmem:[%s852_s8] sm:$0xff] %v2745_v18  ;;  %v4097_v19 = vld [vmem:[%s5195_s22 + $0x38] sm:$0xff]  ;;  %v4096_v20 = vld [vmem:[%s5195_s22 + $0x30] sm:$0xff]  ;;  %v3933_v27 = vld [vmem:[%s5196_s20 + $0x60] sm:$0xf]  ;;  %v2752_v57 = vpack.c.bf16 %v2745_v18, %v2745_v18  ;;  %vm2964_vm14 = vcmask 1040384  }
 0x818   : > { %2818 = vmatpush.bf16.msra.mxu0 %v4097_v19  ;;  %v3941_v21 = vld [vmem:[%s5196_s20 + $0x70] sm:$0xf]  ;;  %v4113_v22 = vld [vmem:[%s5196_s20 + $0x74] sm:$0xf0]  ;;  %v4112_v23 = vld [vmem:[%s5196_s20 + $0x74] sm:$0xf] }
 0x819   : > { %v3943_v24 = vld [vmem:[%s5196_s20 + $0x78] sm:$0xf0]  ;;  %v3942_v25 = vor.u32 %v4113_v22, %v3941_v21  ;;  %v4111_v28 = vld [vmem:[%s5196_s20 + $0x64] sm:$0xf0]  ;;  %v4110_v29 = vld [vmem:[%s5196_s20 + $0x64] sm:$0xf]  ;;  %v2967_v22 = vlaneseq }
 0x81a   : > { %v3946_v26 = vor.u32 %v4112_v23, %v3943_v24  ;;  %v3935_v30 = vld [vmem:[%s5196_s20 + $0x68] sm:$0xf0]  ;;  %v3934_v32 = vor.u32 %v4111_v28, %v3933_v27  ;;  %v3925_v34 = vld [vmem:[%s5196_s20 + $0x50] sm:$0xf]  ;;  %v4109_v35 = vld [vmem:[%s5196_s20 + $0x54] sm:$0xf0] }
 0x81b   : > { %v4095_v31 = vld [vmem:[%s5195_s22 + $0x28] sm:$0xff]  ;;  %2935 = vmatpush.bf16.msra.mxu1 %v3942_v25  ;;  %v3938_v33 = vor.u32 %v4110_v29, %v3935_v30  ;;  %v4108_v36 = vld [vmem:[%s5196_s20 + $0x54] sm:$0xf]  ;;  %v3927_v37 = vld [vmem:[%s5196_s20 + $0x58] sm:$0xf0]  ;;  %v3926_v39 = vor.u32 %v4109_v35, %v3925_v34  ;;  %vm2969_vm15 = vcmp.lt.s32.totalorder %v2967_v22, 256 }
 0x81c   : > { %2819 = vmatpush.bf16.msra.mxu0 %v4096_v20  ;;  %2948 = vmatpush.bf16.msra.mxu2 %v3946_v26  ;;  %v4094_v38 = vld [vmem:[%s5195_s22 + $0x20] sm:$0xff]  ;;  %v3930_v40 = vor.u32 %v4108_v36, %v3927_v37  ;;  %v4107_v42 = vld [vmem:[%s5196_s20 + $0x44] sm:$0xf0]  ;;  %v3919_v44 = vld [vmem:[%s5196_s20 + $0x48] sm:$0xf0] }
 0x81d   : > { %v3917_v41 = vld [vmem:[%s5196_s20 + $0x40] sm:$0xf]  ;;  %v4106_v43 = vld [vmem:[%s5196_s20 + $0x44] sm:$0xf]  ;;  %v4093_v45 = vld [vmem:[%s5195_s22 + $0x18] sm:$0xff] }
 0x81e   : > { %v3918_v46 = vor.u32 %v4107_v42, %v3917_v41  ;;  %v3922_v47 = vor.u32 %v4106_v43, %v3919_v44  ;;  %v3909_v48 = vld [vmem:[%s5196_s20 + $0x30] sm:$0xf]  ;;  %v4105_v49 = vld [vmem:[%s5196_s20 + $0x34] sm:$0xf0]  ;;  %v4104_v50 = vld [vmem:[%s5196_s20 + $0x34] sm:$0xf] }
 0x81f   : > { %2936 = vmatpush.bf16.msra.mxu1 %v3934_v32  ;;  %v3911_v51 = vld [vmem:[%s5196_s20 + $0x38] sm:$0xf0]  ;;  %v4092_v52 = vld [vmem:[%s5195_s22 + $0x10] sm:$0xff]  ;;  %v3910_v53 = vor.u32 %v4105_v49, %v3909_v48  ;;  %v4091_v55 = vld [vmem:[%s5195_s22 + $0x8] sm:$0xff] }
 0x820   : > { %2820 = vmatpush.bf16.msra.mxu0 %v4095_v31  ;;  %2949 = vmatpush.bf16.msra.mxu2 %v3938_v33  ;;  %v3914_v54 = vor.u32 %v4104_v50, %v3911_v51  ;;  %v4090_v56 = vld [vmem:[%s5195_s22] sm:$0xff]  ;;  %v4103_v60 = vld [vmem:[%s5196_s20 + $0x24] sm:$0xf0]  ;;  %v3903_v63 = vld [vmem:[%s5196_s20 + $0x28] sm:$0xf0] }
 0x821   : > { %v3901_v58 = vld [vmem:[%s5196_s20 + $0x20] sm:$0xf]  ;;  %v4102_v61 = vld [vmem:[%s5196_s20 + $0x24] sm:$0xf]  ;;  %v3893_v2 = vld [vmem:[%s5196_s20 + $0x10] sm:$0xf] }
 0x822   : > { %v3902_v62 = vor.u32 %v4103_v60, %v3901_v58  ;;  %v3906_v1 = vor.u32 %v4102_v61, %v3903_v63  ;;  %v4101_v3 = vld [vmem:[%s5196_s20 + $0x14] sm:$0xf0]  ;;  %v4100_v4 = vld [vmem:[%s5196_s20 + $0x14] sm:$0xf]  ;;  %v3895_v6 = vld [vmem:[%s5196_s20 + $0x18] sm:$0xf0] }
 0x823   : > { %2937 = vmatpush.bf16.msra.mxu1 %v3926_v39  ;;  %v3894_v5 = vor.u32 %v4101_v3, %v3893_v2  ;;  %v3898_v7 = vor.u32 %v4100_v4, %v3895_v6  ;;  %v3885_v8 = vld [vmem:[%s5196_s20] sm:$0xf]  ;;  %v4099_v9 = vld [vmem:[%s5196_s20 + $0x4] sm:$0xf0]  ;;  %v4098_v10 = vld [vmem:[%s5196_s20 + $0x4] sm:$0xf] }
 0x824   : > { %2821 = vmatpush.bf16.msra.mxu0 %v4094_v38  ;;  %2950 = vmatpush.bf16.msra.mxu2 %v3930_v40  ;;  %v3886_v59 = vor.u32 %v4099_v9, %v3885_v8  ;;  %v3887_v11 = vld [vmem:[%s5196_s20 + $0x8] sm:$0xf0]  ;;  %v2769_v14 = vld [vmem:[%s5197_s27] sm:$0x1] }
 0x825   : > { %v3890_v13 = vor.u32 %v4098_v10, %v3887_v11  ;;  %v2849_v19 = vld [vmem:[%s5198_s3] sm:$0x3] }
 0x826   : > { %v2932_v20 = vperm.slane %v2849_v19, 1  ;;  %v2931_v21 = vperm.slane %v2849_v19, 0 }
 0x827   : > { %2938 = vmatpush.bf16.msra.mxu1 %v3918_v46 }
 0x828   : > { %2822 = vmatpush.bf16.msra.mxu0 %v4093_v45  ;;  %2951 = vmatpush.bf16.msra.mxu2 %v3922_v47 }
 0x82b   : > { %2939 = vmatpush.bf16.msra.mxu1 %v3910_v53 }
 0x82c   : > { %2823 = vmatpush.bf16.msra.mxu0 %v4092_v52  ;;  %2952 = vmatpush.bf16.msra.mxu2 %v3914_v54 }
 0x82f   : > { %2940 = vmatpush.bf16.msra.mxu1 %v3902_v62 }
 0x830   : > { %2824 = vmatpush.bf16.msra.mxu0 %v4091_v55  ;;  %2953 = vmatpush.bf16.msra.mxu2 %v3906_v1 }
 0x833   : > { %2941 = vmatpush.bf16.msra.mxu1 %v3894_v5 }
 0x834   : > { %2825 = vmatpush.bf16.msra.mxu0 %v4090_v56  ;;  %2954 = vmatpush.bf16.msra.mxu2 %v3898_v7 }
 0x837   : > { %2826 = vmatmul.bf16.vlgmr.msra.gmra.mxu0 %v2752_v57  ;;  %2942 = vmatpush.bf16.msra.mxu1 %v3886_v59 }
 0x838   : > { %2955 = vmatpush.bf16.msra.mxu2 %v3890_v13 }
 0x8b4   : > { %v2827_v0 = vpop.f32.mrf.mxu0 }
 0x8b5   : > { %v2828_v15 = vadd.f32 %v2827_v0, %v2769_v14 }
 0x8b7   : > { %4240 = vtanh.f32 %v2828_v15 }
 0x8bc   : > { %v2829_v12 = vpop.f32.mrf.mxu0 }
 0x8bd   : > { %v4241_v16 = vpop.eup %4240 }
 0x8be   : > { %v2832_v17 = vpack.c.bf16 %v4241_v16, %v4241_v16 }
 0x8c0   : > { %2943 = vmatmul.bf16.vlgmr.msra.gmra.mxu1 %v2832_v17  ;;  %2956 = vmatmul.bf16.vlgmr.msra.gmra.mxu2 %v2832_v17 }
 0x93d   : > { %v2944_v18 = vpop.f32.mrf.mxu1 }
 0x93e   : > { %v2945_v26 = vadd.f32 %v2944_v18, %v2931_v21 }
 0x943   : > { %v2957_v23 = vpop.f32.mrf.mxu2 }
 0x944   : > { %v2958_v24 = vadd.f32 %v2957_v23, %v2932_v20 }
 0x945   : > { %v2946_v25 = vpop.f32.mrf.mxu1 }
 0x946   : > { %v2963_v27 = vrot.slane %v2958_v24, 7 }
 0x948   : > { %v2965_v28 = vsel %vm2964_vm14, %v2945_v26, %v2963_v27 }
 0x949   : > { %2971 = vst.msk [vmem:[%s4609_s29] sm:$0x3] %vm2969_vm15, %v2965_v28 }
 0x94b   : > { %v2959_v29 = vpop.f32.mrf.mxu2 }
 0x94c PF: > { %s5199_s19 = sld [smem:[#allocation10_spill]]  ;;  %s2998_s15 = sshll.u32 %s852_s8, 4  ;;  %s2999_s15 = int_to_ptr.vmem [resolvable:$true] %s2998_s15 }
 0x94d   : > { %s5200_s12 = sld [smem:[#allocation7_spill]] }
 0x94e   : > { %s5202_s9 = sld [smem:[#allocation40_spill]] }
 0x952   : > { %s3948_s28 = sshll.u32 %s5199_s19, 3 }
 0x953   : > { %s5203_s10 = sand.u32 1, %s5200_s12  }
 0x954   : > { %s2996_s7 = scalar_lea.hbm %s5202_s9, %s3948_s28  ;;  %s2973_s17 = scalar_lea.sflag [#allocation4], %s5203_s10 }
 0x955   : > { %s3000_s1 = sshll.u32 %s2996_s7, 4  ;;  %s4262_s2 = scalar_lea.hbm %s5202_s9, 16  ;;  %s3001_s1 = int_to_ptr.hbm [resolvable:$true] %s3000_s1 }
 0x956   : > { %s4256_s11 = sshra.s32 %s3001_s1, 4  ;;  %s4257_s11 = int_to_ptr.hbm [resolvable:$true] %s4256_s11 }
 0x957   : > { %s4258_s29 = scalar_lea.hbm %s4257_s11, 8  ;;  %p4263_p7 = scmp.lt.s32.totalorder %s4257_s11, %s5202_s9 }
 0x958   : > { %p4259_p4 = scmp.ne.s32.totalorder %s4257_s11, %s4258_s29  ;;  %p4264_p8 = scmp.lt.s32.totalorder %s4262_s2, %s4258_s29 }
 0x95a   : > { %p4260_p5 = pnand %p4259_p4, %p4504_p3  ;;  %p4265_p10 = por %p4264_p8, %p4263_p7 }
 0x95c   : > { %p4261_p6 = pneg %p4260_p5 }
 0x95e   : > { %p4266_p11 = pnand %p4265_p10, %p4261_p6 }
 0x960   : > { %4269 = shalt.err (!%p4266_p11)
}
 0x961   : > { %4116 = dma.vmem_to_hbm [thread:$0]  (%p4504_p3), %s2999_s15, 128, %s3001_s1, %s2973_s17  }
 0x962 PF: > { %s5204_s0 = sld [smem:[#allocation13_spill]] }
 0x963   : > { %s5205_s8 = sld [smem:[#allocation6_spill]] }
 0x968   : > { %p4122_p12 = scmp.ge.s32.totalorder %s5204_s0, 2 }
 0x969   : > { %s3019_s21 = sand.u32 1, %s5205_s8  }
 0x96a   : > { %p4119_p13 = pnand %p4122_p12, %p4514_p9  ;;  %s3020_s25 = scalar_lea.sflag [#allocation4], %s3019_s21 }
 0x96c   : > { %p4120_p0 = pneg %p4119_p13 }
 0x96e   : > { %4303 = dma.done.wait (%p4120_p0), %s3020_s25, 128  }
 0x96f   : > { %4305 = vsyncadd (%p4120_p0), %s3020_s25, 4294967168  ;;  %s36_s1 = sadd.s32 1, %s5204_s0   ;;  %s5207_s3 = sld [smem:[#allocation7_spill]] }
 0x970   : > { %p33_p1 = scmp.ge.s32.totalorder %s36_s1, 6   ;;  %s5208_s28 = sld [smem:[#allocation8_spill]] }
 0x971   : > { %s5209_s29 = sld [smem:[#allocation18_spill]] }
 0x972   : > { %s5210_s30 = sld [smem:[#allocation11_spill]]  ;;  %35 = sbr.rel (!%p33_p1) target bundleno = 29 (0x1d), region = 206 }
 0x973   : > { %s5211_s4 = sld [smem:[#allocation12_spill]] }
 0x974   : > { %s5212_s0 = sld [smem:[#allocation14_spill]] }
 0x975   : > { %s5213_s23 = sld [smem:[#allocation16_spill]] }
 0x977   :  { %3045 = vsyncpa [#allocation4], 1 }
 0x978   :  { %3047 = vsyncpa [#allocation4 + $0x1], 1 }

</bundles_post_ra>
